<compile_context>
chip_gen: v7x
topology: tpu7x:2x2x1
jax: 0.10.0
libtpu: 0.0.40
codegen_flags: <defaults>
</compile_context>

<pallas_src>
import functools

import jax
import jax.numpy as jnp
from jax.experimental import pallas as pl
from jax.experimental.pallas import tpu as pltpu

LN_EPS = 1e-5


def _layernorm(x, gamma, beta):
    # torch LayerNorm semantics: fp32 stats, biased variance, eps inside sqrt.
    x32 = x.astype(jnp.float32)
    mu = jnp.mean(x32, axis=-1, keepdims=True)
    var = jnp.mean((x32 - mu) ** 2, axis=-1, keepdims=True)
    return (x32 - mu) * jax.lax.rsqrt(var + LN_EPS) * gamma + beta


def text_block_kernel(x_ref,
                      ln1_g_ref, ln1_b_ref,
                      wqkv_ref, bqkv_ref,
                      wo_ref, bo_ref,
                      ln2_g_ref, ln2_b_ref,
                      wfc_ref, bfc_ref,
                      wproj_ref, bproj_ref,
                      o_ref,
                      *, num_heads):
    Bt, N, C = x_ref.shape
    M = Bt * N
    hd = C // num_heads
    scale = hd ** (-0.5)
    bf16, f32 = jnp.bfloat16, jnp.float32

    # Residual stream kept in f32; matmul operands cast to bf16 (f32 accumulate).
    x = x_ref[...].astype(f32).reshape(M, C)

    # ---------------- attention branch ----------------
    h = _layernorm(x, ln1_g_ref[...], ln1_b_ref[...])                      # (M, C) f32
    qkv = (jnp.dot(h.astype(bf16), wqkv_ref[...],
                   preferred_element_type=f32)
           + bqkv_ref[...]).reshape(Bt, N, 3 * C)                          # (Bt, N, 3C)

    # fold the softmax scale into q (O(M*C)) instead of scaling the NxN scores
    q = qkv[..., 0 * C:1 * C] * scale
    k = qkv[..., 1 * C:2 * C]
    v = qkv[..., 2 * C:3 * C]

    def split_heads(t):
        # (Bt, N, C) -> (Bt*H, N, hd) bf16 via a single reshape + transpose
        # (no per-head lane slicing / concat).
        t = jnp.transpose(t.reshape(Bt, N, num_heads, hd), (0, 2, 1, 3))
        return t.reshape(Bt * num_heads, N, hd).astype(bf16)

    qh, kh, vh = split_heads(q), split_heads(k), split_heads(v)

    # one batched MXU matmul over all (batch, head) pairs
    s = jnp.einsum('bqd,bkd->bqk', qh, kh, preferred_element_type=f32)     # (Bt*H, N, N)
    s = s - jnp.max(s, axis=-1, keepdims=True)
    p = jnp.exp(s)
    p = p / jnp.sum(p, axis=-1, keepdims=True)                             # exact softmax
    ctx = jnp.einsum('bqk,bkd->bqd', p.astype(bf16), vh,
                     preferred_element_type=f32)                           # (Bt*H, N, hd)

    # merge heads back: lanes ordered [head0 | head1 | ...] (out_proj layout)
    ctx = jnp.transpose(ctx.reshape(Bt, num_heads, N, hd),
                        (0, 2, 1, 3)).reshape(M, C)

    attn_out = jnp.dot(ctx.astype(bf16), wo_ref[...],
                       preferred_element_type=f32) + bo_ref[...]
    x = x + attn_out                                                       # residual 1 (f32)

    # ---------------- MLP branch ----------------
    h2 = _layernorm(x, ln2_g_ref[...], ln2_b_ref[...])
    fc = jnp.dot(h2.astype(bf16), wfc_ref[...],
                 preferred_element_type=f32) + bfc_ref[...]                # (M, 4C)
    # QuickGELU: x*sigmoid(1.702x) == x*0.5*(tanh(0.851x)+1)  (1 EUP op/elem)
    fc = fc * (0.5 * (jnp.tanh((0.5 * 1.702) * fc) + 1.0))
    proj = jnp.dot(fc.astype(bf16), wproj_ref[...],
                   preferred_element_type=f32) + bproj_ref[...]
    x = x + proj                                                           # residual 2 (f32)

    o_ref[...] = x.reshape(Bt, N, C).astype(o_ref.dtype)


# ---------------- per-generation sizing --------------------------------------
def _vmem_capacity_bytes():
    try:
        cap = getattr(pltpu.get_tpu_info(), "vmem_capacity_bytes", None)
        if cap:
            return int(cap)
    except Exception:
        pass
    return 64 << 20   # conservative fallback: v7x per-TensorCore VMEM


def _vmem_budget_bytes():
    # ~85% of physical VMEM: leaves headroom for compiler-internal scratch,
    # avoids the old hard 64 MiB cap wasting half of v5e/v6e's 128 MiB.
    return int(_vmem_capacity_bytes() * 0.85)


def _prefer_multi_step():
    # Small-VMEM chips (v7x, 64 MiB) have 2 TensorCores per chip: keep >=2
    # grid steps so the "parallel" batch axis gives both cores work.
    return _vmem_capacity_bytes() <= (96 << 20)


def _estimate_vmem(Bt, N, C, H, weight_bufs):
    """Rough per-step VMEM estimate (bytes) for block_b=Bt."""
    M = Bt * N
    weights = 12 * C * C * 2 * weight_bufs            # bf16 dense weights
    smalls = 2 * (16 * C * 4)                          # biases + LN params (dbl buf)
    io = 2 * 2 * M * C * 4                             # x + out blocks (dbl buf, f32)
    temps = (M * C * 4 * 6                              # x/h/ctx/attn_out/q,k,v-ish
             + M * 3 * C * 4                            # qkv
             + M * 4 * C * 4 * 2                        # fc (f32 + bf16 copy)
             + 2 * H * Bt * N * N * 4)                  # scores + probs
    return int((weights + smalls + io + temps) * 1.3)


def _choose_block_b(B, N, C, H, budget, prefer_multi_step, weight_bufs):
    # Largest divisor of B that fits the VMEM budget; on multi-TC chips keep
    # >=2 grid steps and cap rows/step ~512, on single-TC chips let it grow
    # (fewer ~0.35us grid steps, bigger MXU M dim).
    target_rows = 512 if prefer_multi_step else 2048
    divs = sorted(d for d in range(1, B + 1) if B % d == 0)
    fits = [d for d in divs if _estimate_vmem(d, N, C, H, weight_bufs) <= budget]
    if not fits:
        return 1
    feasible = [d for d in fits if d * N <= target_rows] or fits
    if prefer_multi_step:
        multi = [d for d in feasible if B // d >= 2]
        return max(multi) if multi else max(feasible)
    return max(feasible)


# Constant-block (weight/bias) specs request single buffering; if this jax
# build rejects pipeline_mode=pl.Buffered(1) we fall back to the default.
_WEIGHT_PIPELINE_MODE = [pl.Buffered(1) if hasattr(pl, "Buffered") else None]


def text_block_pallas(x, params, num_heads, block_b=None):
    B, N, C = x.shape
    budget = _vmem_budget_bytes()
    prefer_multi = _prefer_multi_step()
    kernel = functools.partial(text_block_kernel, num_heads=num_heads)

    def build_and_run(weight_mode):
        weight_bufs = 1 if weight_mode is not None else 2
        bb = block_b if block_b is not None else _choose_block_b(
            B, N, C, num_heads, budget, prefer_multi, weight_bufs)
        assert B % bb == 0, "block_b must divide B"

        if weight_mode is not None:
            def const(shape):
                return pl.BlockSpec(shape, lambda b: (0,) * len(shape),
                                    pipeline_mode=weight_mode)
        else:
            def const(shape):
                return pl.BlockSpec(shape, lambda b: (0,) * len(shape))

        return pl.pallas_call(
            kernel,
            out_shape=jax.ShapeDtypeStruct((B, N, C), x.dtype),
            grid_spec=pltpu.PrefetchScalarGridSpec(
                num_scalar_prefetch=0,
                grid=(B // bb,),
                in_specs=[
                    pl.BlockSpec((bb, N, C), lambda b: (b, 0, 0)),   # x
                    const((1, C)), const((1, C)),                    # ln1 gamma/beta
                    const((C, 3 * C)), const((1, 3 * C)),            # qkv W(bf16)/b
                    const((C, C)), const((1, C)),                    # out_proj W(bf16)/b
                    const((1, C)), const((1, C)),                    # ln2 gamma/beta
                    const((C, 4 * C)), const((1, 4 * C)),            # c_fc W(bf16)/b
                    const((4 * C, C)), const((1, C)),                # c_proj W(bf16)/b
                ],
                out_specs=pl.BlockSpec((bb, N, C), lambda b: (b, 0, 0)),
            ),
            compiler_params=pltpu.CompilerParams(
                dimension_semantics=("parallel",),
                vmem_limit_bytes=budget),
        )(x,
          params["ln1_g"], params["ln1_b"],
          params["wqkv"], params["bqkv"],
          params["wo"], params["bo"],
          params["ln2_g"], params["ln2_b"],
          params["wfc"], params["bfc"],
          params["wproj"], params["bproj"])

    if _WEIGHT_PIPELINE_MODE[0] is not None:
        try:
            return build_and_run(_WEIGHT_PIPELINE_MODE[0])
        except Exception:
            # pl.Buffered(1) unsupported on this jax/libtpu: disable for all
            # subsequent layers and retry with default double buffering.
            _WEIGHT_PIPELINE_MODE[0] = None
    return build_and_run(None)


def transformer_pallas(x, layer_params, num_heads):
    # TODO(synk): fuse 2+ layers per pallas_call (or layer as an outer
    # "arbitrary" grid axis over stacked weights) to avoid the per-layer f32
    # residual HBM round-trip on v5e/v6e, and add a cross-call weight
    # prefetch (P10) to hide the 24*C^2-byte per-layer weight stream.
    # TODO(synk): evaluate fp8 weight storage on v7x (per-channel scales
    # folded into the bias epilogue); not portable to v5e/v6e int paths.
    for p in layer_params:
        x = text_block_pallas(x, p, num_heads)
    return x


# ---------------- pure-JAX reference (same bf16 matmul numerics) -------------
def _ref_block(x, p, num_heads):
    B, N, C = x.shape
    hd = C // num_heads
    scale = hd ** (-0.5)
    bf16, f32 = jnp.bfloat16, jnp.float32

    def ln(y, g, b):
        mu = jnp.mean(y, -1, keepdims=True)
        var = jnp.mean((y - mu) ** 2, -1, keepdims=True)
        return (y - mu) / jnp.sqrt(var + LN_EPS) * g + b

    h = ln(x, p["ln1_g"], p["ln1_b"])
    qkv = jnp.dot(h.astype(bf16), p["wqkv"], preferred_element_type=f32) + p["bqkv"]
    qkv = qkv.reshape(B, N, 3, num_heads, hd).transpose(2, 0, 3, 1, 4)
    q, k, v = qkv[0] * scale, qkv[1], qkv[2]                     # (B, H, N, hd) f32
    s = jnp.einsum('bhqd,bhkd->bhqk', q.astype(bf16), k.astype(bf16),
                   preferred_element_type=f32)
    a = jax.nn.softmax(s, axis=-1)
    out = jnp.einsum('bhqk,bhkd->bhqd', a.astype(bf16), v.astype(bf16),
                     preferred_element_type=f32)
    out = out.transpose(0, 2, 1, 3).reshape(B, N, C)
    x = x + jnp.dot(out.astype(bf16), p["wo"], preferred_element_type=f32) + p["bo"]
    h2 = ln(x, p["ln2_g"], p["ln2_b"])
    fc = jnp.dot(h2.astype(bf16), p["wfc"], preferred_element_type=f32) + p["bfc"]
    fc = fc * jax.nn.sigmoid(1.702 * fc)
    return x + jnp.dot(fc.astype(bf16), p["wproj"], preferred_element_type=f32) + p["bproj"]


def _ref_transformer(x, layer_params, num_heads):
    for p in layer_params:
        x = _ref_block(x, p, num_heads)
    return x


# ---------------- deterministic parameter init ------------------------------
def init_layer_params(key, C):
    ks = jax.random.split(key, 8)
    s = 0.02
    f32, bf16 = jnp.float32, jnp.bfloat16
    return {
        "ln1_g": jnp.ones((1, C), f32),
        "ln1_b": jnp.zeros((1, C), f32),
        # torch in_proj_weight is (3C, C); stored here pre-transposed (C, 3C), bf16
        "wqkv": (s * jax.random.normal(ks[0], (C, 3 * C), f32)).astype(bf16),
        "bqkv": s * jax.random.normal(ks[1], (1, 3 * C), f32),
        "wo":   (s * jax.random.normal(ks[2], (C, C), f32)).astype(bf16),
        "bo":   s * jax.random.normal(ks[3], (1, C), f32),
        "ln2_g": jnp.ones((1, C), f32),
        "ln2_b": jnp.zeros((1, C), f32),
        "wfc":   (s * jax.random.normal(ks[4], (C, 4 * C), f32)).astype(bf16),
        "bfc":   s * jax.random.normal(ks[5], (1, 4 * C), f32),
        "wproj": (s * jax.random.normal(ks[6], (4 * C, C), f32)).astype(bf16),
        "bproj": s * jax.random.normal(ks[7], (1, C), f32),
    }


if __name__ == "__main__":
    # Transformer(width=32, layers=2, heads=4, vision=False) — small shapes.
    # (Production CLIP shapes C>=512, N=77 give full 128-lane MXU tiles; this
    # toy config is correctness-only.)
    B, N, C, HEADS, LAYERS = 2, 8, 32, 4, 2

    root = jax.random.PRNGKey(0)
    xkey, *lkeys = jax.random.split(root, LAYERS + 1)
    x = jax.random.normal(xkey, (B, N, C), jnp.float32)
    layer_params = [init_layer_params(k, C) for k in lkeys]

    out = jax.block_until_ready(transformer_pallas(x, layer_params, HEADS))
    ref = jax.block_until_ready(_ref_transformer(x, layer_params, HEADS))

    assert out.shape == (B, N, C)
    # bf16 matmuls in both paths; exact softmax and exact QuickGELU identity
    # => modest tolerance covers accumulation-order differences.
    assert jnp.allclose(out, ref, rtol=1e-2, atol=1e-2), "mismatch vs JAX reference"

    print("KERNEL_OK")
</pallas_src>

<mosaic_0001>
module attributes {stable_mosaic.version = 11 : i64} {
  func.func @text_block_kernel(%arg0: i32, %arg1: memref<1x8x32xf32, #tpu.memory_space<vmem>>, %arg2: memref<1x32xf32, #tpu.memory_space<vmem>>, %arg3: memref<1x32xf32, #tpu.memory_space<vmem>>, %arg4: memref<32x96xbf16, #tpu.memory_space<vmem>>, %arg5: memref<1x96xf32, #tpu.memory_space<vmem>>, %arg6: memref<32x32xbf16, #tpu.memory_space<vmem>>, %arg7: memref<1x32xf32, #tpu.memory_space<vmem>>, %arg8: memref<1x32xf32, #tpu.memory_space<vmem>>, %arg9: memref<1x32xf32, #tpu.memory_space<vmem>>, %arg10: memref<32x128xbf16, #tpu.memory_space<vmem>>, %arg11: memref<1x128xf32, #tpu.memory_space<vmem>>, %arg12: memref<128x32xbf16, #tpu.memory_space<vmem>>, %arg13: memref<1x32xf32, #tpu.memory_space<vmem>>, %arg14: memref<1x8x32xf32, #tpu.memory_space<vmem>>) attributes {dimension_semantics = [#tpu.dimension_semantics<parallel>], iteration_bounds = array<i64: 2>, scalar_prefetch = 0 : i64, scratch_operands = 0 : i64, tpu.core_type = #tpu.core_type<tc>, window_params = [{transform_indices = @transform_0, window_bounds = array<i64: 1, 8, 32>}, {pipeline_mode = #tpu.pipeline_mode<synchronous>, transform_indices = @transform_1, window_bounds = array<i64: 1, 32>}, {pipeline_mode = #tpu.pipeline_mode<synchronous>, transform_indices = @transform_2, window_bounds = array<i64: 1, 32>}, {pipeline_mode = #tpu.pipeline_mode<synchronous>, transform_indices = @transform_3, window_bounds = array<i64: 32, 96>}, {pipeline_mode = #tpu.pipeline_mode<synchronous>, transform_indices = @transform_4, window_bounds = array<i64: 1, 96>}, {pipeline_mode = #tpu.pipeline_mode<synchronous>, transform_indices = @transform_5, window_bounds = array<i64: 32, 32>}, {pipeline_mode = #tpu.pipeline_mode<synchronous>, transform_indices = @transform_6, window_bounds = array<i64: 1, 32>}, {pipeline_mode = #tpu.pipeline_mode<synchronous>, transform_indices = @transform_7, window_bounds = array<i64: 1, 32>}, {pipeline_mode = #tpu.pipeline_mode<synchronous>, transform_indices = @transform_8, window_bounds = array<i64: 1, 32>}, {pipeline_mode = #tpu.pipeline_mode<synchronous>, transform_indices = @transform_9, window_bounds = array<i64: 32, 128>}, {pipeline_mode = #tpu.pipeline_mode<synchronous>, transform_indices = @transform_10, window_bounds = array<i64: 1, 128>}, {pipeline_mode = #tpu.pipeline_mode<synchronous>, transform_indices = @transform_11, window_bounds = array<i64: 128, 32>}, {pipeline_mode = #tpu.pipeline_mode<synchronous>, transform_indices = @transform_12, window_bounds = array<i64: 1, 32>}, {transform_indices = @transform_13, window_bounds = array<i64: 1, 8, 32>}]} {
    %c0 = arith.constant 0 : index
    %c0_0 = arith.constant 0 : index
    %c0_1 = arith.constant 0 : index
    %0 = vector.load %arg1[%c0, %c0_0, %c0_1] : memref<1x8x32xf32, #tpu.memory_space<vmem>>, vector<1x8x32xf32>
    %1 = vector.shape_cast %0 : vector<1x8x32xf32> to vector<8x32xf32>
    %c0_2 = arith.constant 0 : index
    %c0_3 = arith.constant 0 : index
    %2 = vector.load %arg2[%c0_2, %c0_3] : memref<1x32xf32, #tpu.memory_space<vmem>>, vector<1x32xf32>
    %c0_4 = arith.constant 0 : index
    %c0_5 = arith.constant 0 : index
    %3 = vector.load %arg3[%c0_4, %c0_5] : memref<1x32xf32, #tpu.memory_space<vmem>>, vector<1x32xf32>
    %cst = arith.constant dense<0.000000e+00> : vector<8xf32>
    %4 = vector.multi_reduction <add>, %1, %cst [1] : vector<8x32xf32> to vector<8xf32>
    %5 = vector.shape_cast %4 : vector<8xf32> to vector<8x1xf32>
    %cst_6 = arith.constant 3.200000e+01 : f32
    %6 = vector.broadcast %cst_6 : f32 to vector<8x1xf32>
    %7 = arith.divf %5, %6 : vector<8x1xf32>
    %8 = vector.broadcast %7 : vector<8x1xf32> to vector<8x32xf32>
    %9 = arith.subf %1, %8 : vector<8x32xf32>
    %10 = arith.mulf %9, %9 : vector<8x32xf32>
    %cst_7 = arith.constant dense<0.000000e+00> : vector<8xf32>
    %11 = vector.multi_reduction <add>, %10, %cst_7 [1] : vector<8x32xf32> to vector<8xf32>
    %12 = vector.shape_cast %11 : vector<8xf32> to vector<8x1xf32>
    %cst_8 = arith.constant 3.200000e+01 : f32
    %13 = vector.broadcast %cst_8 : f32 to vector<8x1xf32>
    %14 = arith.divf %12, %13 : vector<8x1xf32>
    %15 = vector.broadcast %7 : vector<8x1xf32> to vector<8x32xf32>
    %16 = arith.subf %1, %15 : vector<8x32xf32>
    %cst_9 = arith.constant 9.99999974E-6 : f32
    %17 = vector.broadcast %cst_9 : f32 to vector<8x1xf32>
    %18 = arith.addf %14, %17 : vector<8x1xf32>
    %19 = math.rsqrt %18 : vector<8x1xf32>
    %20 = vector.broadcast %19 : vector<8x1xf32> to vector<8x32xf32>
    %21 = arith.mulf %16, %20 : vector<8x32xf32>
    %22 = vector.broadcast %2 : vector<1x32xf32> to vector<8x32xf32>
    %23 = arith.mulf %21, %22 : vector<8x32xf32>
    %24 = vector.broadcast %3 : vector<1x32xf32> to vector<8x32xf32>
    %25 = arith.addf %23, %24 : vector<8x32xf32>
    %26 = arith.truncf %25 : vector<8x32xf32> to vector<8x32xbf16>
    %c0_10 = arith.constant 0 : index
    %c0_11 = arith.constant 0 : index
    %27 = vector.load %arg4[%c0_10, %c0_11] : memref<32x96xbf16, #tpu.memory_space<vmem>>, vector<32x96xbf16>
    %cst_12 = arith.constant dense<0.000000e+00> : vector<8x96xf32>
    %28 = tpu.matmul %26, %27, %cst_12 {dimension_numbers = #tpu.dot_dimension_numbers<[1], [0], [0], [1], [0, 0, 1, 1], [], []>} : vector<8x32xbf16>, vector<32x96xbf16>, vector<8x96xf32> -> vector<8x96xf32>
    %c0_13 = arith.constant 0 : index
    %c0_14 = arith.constant 0 : index
    %29 = vector.load %arg5[%c0_13, %c0_14] : memref<1x96xf32, #tpu.memory_space<vmem>>, vector<1x96xf32>
    %30 = vector.broadcast %29 : vector<1x96xf32> to vector<8x96xf32>
    %31 = arith.addf %28, %30 : vector<8x96xf32>
    %32 = vector.shape_cast %31 : vector<8x96xf32> to vector<1x8x96xf32>
    %33 = vector.extract_strided_slice %32 {offsets = [0, 0, 0], sizes = [1, 8, 32], strides = [1, 1, 1]} : vector<1x8x96xf32> to vector<1x8x32xf32>
    %cst_15 = arith.constant 0.353553385 : f32
    %34 = vector.broadcast %cst_15 : f32 to vector<1x8x32xf32>
    %35 = arith.mulf %33, %34 : vector<1x8x32xf32>
    %36 = vector.extract_strided_slice %32 {offsets = [0, 0, 32], sizes = [1, 8, 32], strides = [1, 1, 1]} : vector<1x8x96xf32> to vector<1x8x32xf32>
    %37 = vector.extract_strided_slice %32 {offsets = [0, 0, 64], sizes = [1, 8, 32], strides = [1, 1, 1]} : vector<1x8x96xf32> to vector<1x8x32xf32>
    %38 = vector.shape_cast %35 : vector<1x8x32xf32> to vector<1x8x4x8xf32>
    %39 = tpu.transpose %38, [0, 2, 1, 3] : vector<1x8x4x8xf32> -> vector<1x4x8x8xf32>
    %40 = vector.shape_cast %39 : vector<1x4x8x8xf32> to vector<4x8x8xf32>
    %41 = arith.truncf %40 : vector<4x8x8xf32> to vector<4x8x8xbf16>
    %42 = vector.shape_cast %36 : vector<1x8x32xf32> to vector<1x8x4x8xf32>
    %43 = tpu.transpose %42, [0, 2, 1, 3] : vector<1x8x4x8xf32> -> vector<1x4x8x8xf32>
    %44 = vector.shape_cast %43 : vector<1x4x8x8xf32> to vector<4x8x8xf32>
    %45 = arith.truncf %44 : vector<4x8x8xf32> to vector<4x8x8xbf16>
    %46 = vector.shape_cast %37 : vector<1x8x32xf32> to vector<1x8x4x8xf32>
    %47 = tpu.transpose %46, [0, 2, 1, 3] : vector<1x8x4x8xf32> -> vector<1x4x8x8xf32>
    %48 = vector.shape_cast %47 : vector<1x4x8x8xf32> to vector<4x8x8xf32>
    %49 = arith.truncf %48 : vector<4x8x8xf32> to vector<4x8x8xbf16>
    "tpu.trace_start"() <{level = 10 : i32, message = "bqd,bkd->bqk"}> : () -> ()
    %cst_16 = arith.constant dense<0.000000e+00> : vector<4x8x8xf32>
    %50 = tpu.matmul %41, %45, %cst_16 {dimension_numbers = #tpu.dot_dimension_numbers<[2], [2], [1], [1], [0, 0, 0, 1, 1, 1], [0], [0]>} : vector<4x8x8xbf16>, vector<4x8x8xbf16>, vector<4x8x8xf32> -> vector<4x8x8xf32>
    "tpu.trace_stop"() : () -> ()
    %cst_17 = arith.constant dense<0xFF800000> : vector<4x8xf32>
    %51 = vector.multi_reduction <maximumf>, %50, %cst_17 [2] : vector<4x8x8xf32> to vector<4x8xf32>
    %52 = vector.shape_cast %51 : vector<4x8xf32> to vector<4x8x1xf32>
    %53 = vector.broadcast %52 : vector<4x8x1xf32> to vector<4x8x8xf32>
    %54 = arith.subf %50, %53 : vector<4x8x8xf32>
    %55 = math.exp %54 : vector<4x8x8xf32>
    %cst_18 = arith.constant dense<0.000000e+00> : vector<4x8xf32>
    %56 = vector.multi_reduction <add>, %55, %cst_18 [2] : vector<4x8x8xf32> to vector<4x8xf32>
    %57 = vector.shape_cast %56 : vector<4x8xf32> to vector<4x8x1xf32>
    %58 = vector.broadcast %57 : vector<4x8x1xf32> to vector<4x8x8xf32>
    %59 = arith.divf %55, %58 : vector<4x8x8xf32>
    %60 = arith.truncf %59 : vector<4x8x8xf32> to vector<4x8x8xbf16>
    "tpu.trace_start"() <{level = 10 : i32, message = "bqk,bkd->bqd"}> : () -> ()
    %cst_19 = arith.constant dense<0.000000e+00> : vector<4x8x8xf32>
    %61 = tpu.matmul %60, %49, %cst_19 {dimension_numbers = #tpu.dot_dimension_numbers<[2], [1], [1], [2], [0, 0, 0, 1, 1, 2], [0], [0]>} : vector<4x8x8xbf16>, vector<4x8x8xbf16>, vector<4x8x8xf32> -> vector<4x8x8xf32>
    "tpu.trace_stop"() : () -> ()
    %62 = vector.shape_cast %61 : vector<4x8x8xf32> to vector<1x4x8x8xf32>
    %63 = tpu.transpose %62, [0, 2, 1, 3] : vector<1x4x8x8xf32> -> vector<1x8x4x8xf32>
    %64 = vector.shape_cast %63 : vector<1x8x4x8xf32> to vector<8x32xf32>
    %65 = arith.truncf %64 : vector<8x32xf32> to vector<8x32xbf16>
    %c0_20 = arith.constant 0 : index
    %c0_21 = arith.constant 0 : index
    %66 = vector.load %arg6[%c0_20, %c0_21] : memref<32x32xbf16, #tpu.memory_space<vmem>>, vector<32x32xbf16>
    %cst_22 = arith.constant dense<0.000000e+00> : vector<8x32xf32>
    %67 = tpu.matmul %65, %66, %cst_22 {dimension_numbers = #tpu.dot_dimension_numbers<[1], [0], [0], [1], [0, 0, 1, 1], [], []>} : vector<8x32xbf16>, vector<32x32xbf16>, vector<8x32xf32> -> vector<8x32xf32>
    %c0_23 = arith.constant 0 : index
    %c0_24 = arith.constant 0 : index
    %68 = vector.load %arg7[%c0_23, %c0_24] : memref<1x32xf32, #tpu.memory_space<vmem>>, vector<1x32xf32>
    %69 = vector.broadcast %68 : vector<1x32xf32> to vector<8x32xf32>
    %70 = arith.addf %67, %69 : vector<8x32xf32>
    %71 = arith.addf %1, %70 : vector<8x32xf32>
    %c0_25 = arith.constant 0 : index
    %c0_26 = arith.constant 0 : index
    %72 = vector.load %arg8[%c0_25, %c0_26] : memref<1x32xf32, #tpu.memory_space<vmem>>, vector<1x32xf32>
    %c0_27 = arith.constant 0 : index
    %c0_28 = arith.constant 0 : index
    %73 = vector.load %arg9[%c0_27, %c0_28] : memref<1x32xf32, #tpu.memory_space<vmem>>, vector<1x32xf32>
    %cst_29 = arith.constant dense<0.000000e+00> : vector<8xf32>
    %74 = vector.multi_reduction <add>, %71, %cst_29 [1] : vector<8x32xf32> to vector<8xf32>
    %75 = vector.shape_cast %74 : vector<8xf32> to vector<8x1xf32>
    %cst_30 = arith.constant 3.200000e+01 : f32
    %76 = vector.broadcast %cst_30 : f32 to vector<8x1xf32>
    %77 = arith.divf %75, %76 : vector<8x1xf32>
    %78 = vector.broadcast %77 : vector<8x1xf32> to vector<8x32xf32>
    %79 = arith.subf %71, %78 : vector<8x32xf32>
    %80 = arith.mulf %79, %79 : vector<8x32xf32>
    %cst_31 = arith.constant dense<0.000000e+00> : vector<8xf32>
    %81 = vector.multi_reduction <add>, %80, %cst_31 [1] : vector<8x32xf32> to vector<8xf32>
    %82 = vector.shape_cast %81 : vector<8xf32> to vector<8x1xf32>
    %cst_32 = arith.constant 3.200000e+01 : f32
    %83 = vector.broadcast %cst_32 : f32 to vector<8x1xf32>
    %84 = arith.divf %82, %83 : vector<8x1xf32>
    %85 = vector.broadcast %77 : vector<8x1xf32> to vector<8x32xf32>
    %86 = arith.subf %71, %85 : vector<8x32xf32>
    %cst_33 = arith.constant 9.99999974E-6 : f32
    %87 = vector.broadcast %cst_33 : f32 to vector<8x1xf32>
    %88 = arith.addf %84, %87 : vector<8x1xf32>
    %89 = math.rsqrt %88 : vector<8x1xf32>
    %90 = vector.broadcast %89 : vector<8x1xf32> to vector<8x32xf32>
    %91 = arith.mulf %86, %90 : vector<8x32xf32>
    %92 = vector.broadcast %72 : vector<1x32xf32> to vector<8x32xf32>
    %93 = arith.mulf %91, %92 : vector<8x32xf32>
    %94 = vector.broadcast %73 : vector<1x32xf32> to vector<8x32xf32>
    %95 = arith.addf %93, %94 : vector<8x32xf32>
    %96 = arith.truncf %95 : vector<8x32xf32> to vector<8x32xbf16>
    %c0_34 = arith.constant 0 : index
    %c0_35 = arith.constant 0 : index
    %97 = vector.load %arg10[%c0_34, %c0_35] : memref<32x128xbf16, #tpu.memory_space<vmem>>, vector<32x128xbf16>
    %cst_36 = arith.constant dense<0.000000e+00> : vector<8x128xf32>
    %98 = tpu.matmul %96, %97, %cst_36 {dimension_numbers = #tpu.dot_dimension_numbers<[1], [0], [0], [1], [0, 0, 1, 1], [], []>} : vector<8x32xbf16>, vector<32x128xbf16>, vector<8x128xf32> -> vector<8x128xf32>
    %c0_37 = arith.constant 0 : index
    %c0_38 = arith.constant 0 : index
    %99 = vector.load %arg11[%c0_37, %c0_38] : memref<1x128xf32, #tpu.memory_space<vmem>>, vector<1x128xf32>
    %100 = vector.broadcast %99 : vector<1x128xf32> to vector<8x128xf32>
    %101 = arith.addf %98, %100 : vector<8x128xf32>
    %cst_39 = arith.constant 8.510000e-01 : f32
    %102 = vector.broadcast %cst_39 : f32 to vector<8x128xf32>
    %103 = arith.mulf %102, %101 : vector<8x128xf32>
    %104 = math.tanh %103 : vector<8x128xf32>
    %cst_40 = arith.constant 1.000000e+00 : f32
    %105 = vector.broadcast %cst_40 : f32 to vector<8x128xf32>
    %106 = arith.addf %104, %105 : vector<8x128xf32>
    %cst_41 = arith.constant 5.000000e-01 : f32
    %107 = vector.broadcast %cst_41 : f32 to vector<8x128xf32>
    %108 = arith.mulf %107, %106 : vector<8x128xf32>
    %109 = arith.mulf %101, %108 : vector<8x128xf32>
    %110 = arith.truncf %109 : vector<8x128xf32> to vector<8x128xbf16>
    %c0_42 = arith.constant 0 : index
    %c0_43 = arith.constant 0 : index
    %111 = vector.load %arg12[%c0_42, %c0_43] : memref<128x32xbf16, #tpu.memory_space<vmem>>, vector<128x32xbf16>
    %cst_44 = arith.constant dense<0.000000e+00> : vector<8x32xf32>
    %112 = tpu.matmul %110, %111, %cst_44 {dimension_numbers = #tpu.dot_dimension_numbers<[1], [0], [0], [1], [0, 0, 1, 1], [], []>} : vector<8x128xbf16>, vector<128x32xbf16>, vector<8x32xf32> -> vector<8x32xf32>
    %c0_45 = arith.constant 0 : index
    %c0_46 = arith.constant 0 : index
    %113 = vector.load %arg13[%c0_45, %c0_46] : memref<1x32xf32, #tpu.memory_space<vmem>>, vector<1x32xf32>
    %114 = vector.broadcast %113 : vector<1x32xf32> to vector<8x32xf32>
    %115 = arith.addf %112, %114 : vector<8x32xf32>
    %116 = arith.addf %71, %115 : vector<8x32xf32>
    %117 = vector.shape_cast %116 : vector<8x32xf32> to vector<1x8x32xf32>
    %c0_47 = arith.constant 0 : index
    %c0_48 = arith.constant 0 : index
    %c0_49 = arith.constant 0 : index
    %118 = vector.load %arg14[%c0_47, %c0_48, %c0_49] : memref<1x8x32xf32, #tpu.memory_space<vmem>>, vector<1x8x32xf32>
    tpu.vector_store %arg14[%c0_47, %c0_48, %c0_49], %117 {strides = array<i32>} : memref<1x8x32xf32, #tpu.memory_space<vmem>>, vector<1x8x32xf32>,
    return
  }
  func.func @transform_0(%arg0: i32) -> (i32, i32, i32) {
    %c0_i32 = arith.constant 0 : i32
    %c0_i32_0 = arith.constant 0 : i32
    %c0_i32_1 = arith.constant 0 : i32
    return %arg0, %c0_i32, %c0_i32_0 : i32, i32, i32
  }
  func.func @transform_1(%arg0: i32) -> (i32, i32) {
    %c0_i32 = arith.constant 0 : i32
    %c0_i32_0 = arith.constant 0 : i32
    %c0_i32_1 = arith.constant 0 : i32
    return %c0_i32, %c0_i32_0 : i32, i32
  }
  func.func @transform_2(%arg0: i32) -> (i32, i32) {
    %c0_i32 = arith.constant 0 : i32
    %c0_i32_0 = arith.constant 0 : i32
    %c0_i32_1 = arith.constant 0 : i32
    return %c0_i32, %c0_i32_0 : i32, i32
  }
  func.func @transform_3(%arg0: i32) -> (i32, i32) {
    %c0_i32 = arith.constant 0 : i32
    %c0_i32_0 = arith.constant 0 : i32
    %c0_i32_1 = arith.constant 0 : i32
    return %c0_i32, %c0_i32_0 : i32, i32
  }
  func.func @transform_4(%arg0: i32) -> (i32, i32) {
    %c0_i32 = arith.constant 0 : i32
    %c0_i32_0 = arith.constant 0 : i32
    %c0_i32_1 = arith.constant 0 : i32
    return %c0_i32, %c0_i32_0 : i32, i32
  }
  func.func @transform_5(%arg0: i32) -> (i32, i32) {
    %c0_i32 = arith.constant 0 : i32
    %c0_i32_0 = arith.constant 0 : i32
    %c0_i32_1 = arith.constant 0 : i32
    return %c0_i32, %c0_i32_0 : i32, i32
  }
  func.func @transform_6(%arg0: i32) -> (i32, i32) {
    %c0_i32 = arith.constant 0 : i32
    %c0_i32_0 = arith.constant 0 : i32
    %c0_i32_1 = arith.constant 0 : i32
    return %c0_i32, %c0_i32_0 : i32, i32
  }
  func.func @transform_7(%arg0: i32) -> (i32, i32) {
    %c0_i32 = arith.constant 0 : i32
    %c0_i32_0 = arith.constant 0 : i32
    %c0_i32_1 = arith.constant 0 : i32
    return %c0_i32, %c0_i32_0 : i32, i32
  }
  func.func @transform_8(%arg0: i32) -> (i32, i32) {
    %c0_i32 = arith.constant 0 : i32
    %c0_i32_0 = arith.constant 0 : i32
    %c0_i32_1 = arith.constant 0 : i32
    return %c0_i32, %c0_i32_0 : i32, i32
  }
  func.func @transform_9(%arg0: i32) -> (i32, i32) {
    %c0_i32 = arith.constant 0 : i32
    %c0_i32_0 = arith.constant 0 : i32
    %c0_i32_1 = arith.constant 0 : i32
    return %c0_i32, %c0_i32_0 : i32, i32
  }
  func.func @transform_10(%arg0: i32) -> (i32, i32) {
    %c0_i32 = arith.constant 0 : i32
    %c0_i32_0 = arith.constant 0 : i32
    %c0_i32_1 = arith.constant 0 : i32
    return %c0_i32, %c0_i32_0 : i32, i32
  }
  func.func @transform_11(%arg0: i32) -> (i32, i32) {
    %c0_i32 = arith.constant 0 : i32
    %c0_i32_0 = arith.constant 0 : i32
    %c0_i32_1 = arith.constant 0 : i32
    return %c0_i32, %c0_i32_0 : i32, i32
  }
  func.func @transform_12(%arg0: i32) -> (i32, i32) {
    %c0_i32 = arith.constant 0 : i32
    %c0_i32_0 = arith.constant 0 : i32
    %c0_i32_1 = arith.constant 0 : i32
    return %c0_i32, %c0_i32_0 : i32, i32
  }
  func.func @transform_13(%arg0: i32) -> (i32, i32, i32) {
    %c0_i32 = arith.constant 0 : i32
    %c0_i32_0 = arith.constant 0 : i32
    %c0_i32_1 = arith.constant 0 : i32
    return %arg0, %c0_i32, %c0_i32_0 : i32, i32, i32
  }
}

module attributes {stable_mosaic.version = 11 : i64} {
  func.func @text_block_kernel(%arg0: i32, %arg1: memref<1x8x32xf32, #tpu.memory_space<vmem>>, %arg2: memref<1x32xf32, #tpu.memory_space<vmem>>, %arg3: memref<1x32xf32, #tpu.memory_space<vmem>>, %arg4: memref<32x96xbf16, #tpu.memory_space<vmem>>, %arg5: memref<1x96xf32, #tpu.memory_space<vmem>>, %arg6: memref<32x32xbf16, #tpu.memory_space<vmem>>, %arg7: memref<1x32xf32, #tpu.memory_space<vmem>>, %arg8: memref<1x32xf32, #tpu.memory_space<vmem>>, %arg9: memref<1x32xf32, #tpu.memory_space<vmem>>, %arg10: memref<32x128xbf16, #tpu.memory_space<vmem>>, %arg11: memref<1x128xf32, #tpu.memory_space<vmem>>, %arg12: memref<128x32xbf16, #tpu.memory_space<vmem>>, %arg13: memref<1x32xf32, #tpu.memory_space<vmem>>, %arg14: memref<1x8x32xf32, #tpu.memory_space<vmem>>) attributes {dimension_semantics = [#tpu.dimension_semantics<parallel>], iteration_bounds = array<i64: 2>, scalar_prefetch = 0 : i64, scratch_operands = 0 : i64, tpu.core_type = #tpu.core_type<tc>, window_params = [{transform_indices = @transform_0, window_bounds = array<i64: 1, 8, 32>}, {pipeline_mode = #tpu.pipeline_mode<synchronous>, transform_indices = @transform_1, window_bounds = array<i64: 1, 32>}, {pipeline_mode = #tpu.pipeline_mode<synchronous>, transform_indices = @transform_2, window_bounds = array<i64: 1, 32>}, {pipeline_mode = #tpu.pipeline_mode<synchronous>, transform_indices = @transform_3, window_bounds = array<i64: 32, 96>}, {pipeline_mode = #tpu.pipeline_mode<synchronous>, transform_indices = @transform_4, window_bounds = array<i64: 1, 96>}, {pipeline_mode = #tpu.pipeline_mode<synchronous>, transform_indices = @transform_5, window_bounds = array<i64: 32, 32>}, {pipeline_mode = #tpu.pipeline_mode<synchronous>, transform_indices = @transform_6, window_bounds = array<i64: 1, 32>}, {pipeline_mode = #tpu.pipeline_mode<synchronous>, transform_indices = @transform_7, window_bounds = array<i64: 1, 32>}, {pipeline_mode = #tpu.pipeline_mode<synchronous>, transform_indices = @transform_8, window_bounds = array<i64: 1, 32>}, {pipeline_mode = #tpu.pipeline_mode<synchronous>, transform_indices = @transform_9, window_bounds = array<i64: 32, 128>}, {pipeline_mode = #tpu.pipeline_mode<synchronous>, transform_indices = @transform_10, window_bounds = array<i64: 1, 128>}, {pipeline_mode = #tpu.pipeline_mode<synchronous>, transform_indices = @transform_11, window_bounds = array<i64: 128, 32>}, {pipeline_mode = #tpu.pipeline_mode<synchronous>, transform_indices = @transform_12, window_bounds = array<i64: 1, 32>}, {transform_indices = @transform_13, window_bounds = array<i64: 1, 8, 32>}]} {
    %c0 = arith.constant 0 : index
    %c0_0 = arith.constant 0 : index
    %c0_1 = arith.constant 0 : index
    %0 = vector.load %arg1[%c0, %c0_0, %c0_1] : memref<1x8x32xf32, #tpu.memory_space<vmem>>, vector<1x8x32xf32>
    %1 = vector.shape_cast %0 : vector<1x8x32xf32> to vector<8x32xf32>
    %c0_2 = arith.constant 0 : index
    %c0_3 = arith.constant 0 : index
    %2 = vector.load %arg2[%c0_2, %c0_3] : memref<1x32xf32, #tpu.memory_space<vmem>>, vector<1x32xf32>
    %c0_4 = arith.constant 0 : index
    %c0_5 = arith.constant 0 : index
    %3 = vector.load %arg3[%c0_4, %c0_5] : memref<1x32xf32, #tpu.memory_space<vmem>>, vector<1x32xf32>
    %cst = arith.constant dense<0.000000e+00> : vector<8xf32>
    %4 = vector.multi_reduction <add>, %1, %cst [1] : vector<8x32xf32> to vector<8xf32>
    %5 = vector.shape_cast %4 : vector<8xf32> to vector<8x1xf32>
    %cst_6 = arith.constant 3.200000e+01 : f32
    %6 = vector.broadcast %cst_6 : f32 to vector<8x1xf32>
    %7 = arith.divf %5, %6 : vector<8x1xf32>
    %8 = vector.broadcast %7 : vector<8x1xf32> to vector<8x32xf32>
    %9 = arith.subf %1, %8 : vector<8x32xf32>
    %10 = arith.mulf %9, %9 : vector<8x32xf32>
    %cst_7 = arith.constant dense<0.000000e+00> : vector<8xf32>
    %11 = vector.multi_reduction <add>, %10, %cst_7 [1] : vector<8x32xf32> to vector<8xf32>
    %12 = vector.shape_cast %11 : vector<8xf32> to vector<8x1xf32>
    %cst_8 = arith.constant 3.200000e+01 : f32
    %13 = vector.broadcast %cst_8 : f32 to vector<8x1xf32>
    %14 = arith.divf %12, %13 : vector<8x1xf32>
    %15 = vector.broadcast %7 : vector<8x1xf32> to vector<8x32xf32>
    %16 = arith.subf %1, %15 : vector<8x32xf32>
    %cst_9 = arith.constant 9.99999974E-6 : f32
    %17 = vector.broadcast %cst_9 : f32 to vector<8x1xf32>
    %18 = arith.addf %14, %17 : vector<8x1xf32>
    %19 = math.rsqrt %18 : vector<8x1xf32>
    %20 = vector.broadcast %19 : vector<8x1xf32> to vector<8x32xf32>
    %21 = arith.mulf %16, %20 : vector<8x32xf32>
    %22 = vector.broadcast %2 : vector<1x32xf32> to vector<8x32xf32>
    %23 = arith.mulf %21, %22 : vector<8x32xf32>
    %24 = vector.broadcast %3 : vector<1x32xf32> to vector<8x32xf32>
    %25 = arith.addf %23, %24 : vector<8x32xf32>
    %26 = arith.truncf %25 : vector<8x32xf32> to vector<8x32xbf16>
    %c0_10 = arith.constant 0 : index
    %c0_11 = arith.constant 0 : index
    %27 = vector.load %arg4[%c0_10, %c0_11] : memref<32x96xbf16, #tpu.memory_space<vmem>>, vector<32x96xbf16>
    %cst_12 = arith.constant dense<0.000000e+00> : vector<8x96xf32>
    %28 = tpu.matmul %26, %27, %cst_12 {dimension_numbers = #tpu.dot_dimension_numbers<[1], [0], [0], [1], [0, 0, 1, 1], [], []>} : vector<8x32xbf16>, vector<32x96xbf16>, vector<8x96xf32> -> vector<8x96xf32>
    %c0_13 = arith.constant 0 : index
    %c0_14 = arith.constant 0 : index
    %29 = vector.load %arg5[%c0_13, %c0_14] : memref<1x96xf32, #tpu.memory_space<vmem>>, vector<1x96xf32>
    %30 = vector.broadcast %29 : vector<1x96xf32> to vector<8x96xf32>
    %31 = arith.addf %28, %30 : vector<8x96xf32>
    %32 = vector.shape_cast %31 : vector<8x96xf32> to vector<1x8x96xf32>
    %33 = vector.extract_strided_slice %32 {offsets = [0, 0, 0], sizes = [1, 8, 32], strides = [1, 1, 1]} : vector<1x8x96xf32> to vector<1x8x32xf32>
    %cst_15 = arith.constant 0.353553385 : f32
    %34 = vector.broadcast %cst_15 : f32 to vector<1x8x32xf32>
    %35 = arith.mulf %33, %34 : vector<1x8x32xf32>
    %36 = vector.extract_strided_slice %32 {offsets = [0, 0, 32], sizes = [1, 8, 32], strides = [1, 1, 1]} : vector<1x8x96xf32> to vector<1x8x32xf32>
    %37 = vector.extract_strided_slice %32 {offsets = [0, 0, 64], sizes = [1, 8, 32], strides = [1, 1, 1]} : vector<1x8x96xf32> to vector<1x8x32xf32>
    %38 = vector.shape_cast %35 : vector<1x8x32xf32> to vector<1x8x4x8xf32>
    %39 = tpu.transpose %38, [0, 2, 1, 3] : vector<1x8x4x8xf32> -> vector<1x4x8x8xf32>
    %40 = vector.shape_cast %39 : vector<1x4x8x8xf32> to vector<4x8x8xf32>
    %41 = arith.truncf %40 : vector<4x8x8xf32> to vector<4x8x8xbf16>
    %42 = vector.shape_cast %36 : vector<1x8x32xf32> to vector<1x8x4x8xf32>
    %43 = tpu.transpose %42, [0, 2, 1, 3] : vector<1x8x4x8xf32> -> vector<1x4x8x8xf32>
    %44 = vector.shape_cast %43 : vector<1x4x8x8xf32> to vector<4x8x8xf32>
    %45 = arith.truncf %44 : vector<4x8x8xf32> to vector<4x8x8xbf16>
    %46 = vector.shape_cast %37 : vector<1x8x32xf32> to vector<1x8x4x8xf32>
    %47 = tpu.transpose %46, [0, 2, 1, 3] : vector<1x8x4x8xf32> -> vector<1x4x8x8xf32>
    %48 = vector.shape_cast %47 : vector<1x4x8x8xf32> to vector<4x8x8xf32>
    %49 = arith.truncf %48 : vector<4x8x8xf32> to vector<4x8x8xbf16>
    "tpu.trace_start"() <{level = 10 : i32, message = "bqd,bkd->bqk"}> : () -> ()
    %cst_16 = arith.constant dense<0.000000e+00> : vector<4x8x8xf32>
    %50 = tpu.matmul %41, %45, %cst_16 {dimension_numbers = #tpu.dot_dimension_numbers<[2], [2], [1], [1], [0, 0, 0, 1, 1, 1], [0], [0]>} : vector<4x8x8xbf16>, vector<4x8x8xbf16>, vector<4x8x8xf32> -> vector<4x8x8xf32>
    "tpu.trace_stop"() : () -> ()
    %cst_17 = arith.constant dense<0xFF800000> : vector<4x8xf32>
    %51 = vector.multi_reduction <maximumf>, %50, %cst_17 [2] : vector<4x8x8xf32> to vector<4x8xf32>
    %52 = vector.shape_cast %51 : vector<4x8xf32> to vector<4x8x1xf32>
    %53 = vector.broadcast %52 : vector<4x8x1xf32> to vector<4x8x8xf32>
    %54 = arith.subf %50, %53 : vector<4x8x8xf32>
    %55 = math.exp %54 : vector<4x8x8xf32>
    %cst_18 = arith.constant dense<0.000000e+00> : vector<4x8xf32>
    %56 = vector.multi_reduction <add>, %55, %cst_18 [2] : vector<4x8x8xf32> to vector<4x8xf32>
    %57 = vector.shape_cast %56 : vector<4x8xf32> to vector<4x8x1xf32>
    %58 = vector.broadcast %57 : vector<4x8x1xf32> to vector<4x8x8xf32>
    %59 = arith.divf %55, %58 : vector<4x8x8xf32>
    %60 = arith.truncf %59 : vector<4x8x8xf32> to vector<4x8x8xbf16>
    "tpu.trace_start"() <{level = 10 : i32, message = "bqk,bkd->bqd"}> : () -> ()
    %cst_19 = arith.constant dense<0.000000e+00> : vector<4x8x8xf32>
    %61 = tpu.matmul %60, %49, %cst_19 {dimension_numbers = #tpu.dot_dimension_numbers<[2], [1], [1], [2], [0, 0, 0, 1, 1, 2], [0], [0]>} : vector<4x8x8xbf16>, vector<4x8x8xbf16>, vector<4x8x8xf32> -> vector<4x8x8xf32>
    "tpu.trace_stop"() : () -> ()
    %62 = vector.shape_cast %61 : vector<4x8x8xf32> to vector<1x4x8x8xf32>
    %63 = tpu.transpose %62, [0, 2, 1, 3] : vector<1x4x8x8xf32> -> vector<1x8x4x8xf32>
    %64 = vector.shape_cast %63 : vector<1x8x4x8xf32> to vector<8x32xf32>
    %65 = arith.truncf %64 : vector<8x32xf32> to vector<8x32xbf16>
    %c0_20 = arith.constant 0 : index
    %c0_21 = arith.constant 0 : index
    %66 = vector.load %arg6[%c0_20, %c0_21] : memref<32x32xbf16, #tpu.memory_space<vmem>>, vector<32x32xbf16>
    %cst_22 = arith.constant dense<0.000000e+00> : vector<8x32xf32>
    %67 = tpu.matmul %65, %66, %cst_22 {dimension_numbers = #tpu.dot_dimension_numbers<[1], [0], [0], [1], [0, 0, 1, 1], [], []>} : vector<8x32xbf16>, vector<32x32xbf16>, vector<8x32xf32> -> vector<8x32xf32>
    %c0_23 = arith.constant 0 : index
    %c0_24 = arith.constant 0 : index
    %68 = vector.load %arg7[%c0_23, %c0_24] : memref<1x32xf32, #tpu.memory_space<vmem>>, vector<1x32xf32>
    %69 = vector.broadcast %68 : vector<1x32xf32> to vector<8x32xf32>
    %70 = arith.addf %67, %69 : vector<8x32xf32>
    %71 = arith.addf %1, %70 : vector<8x32xf32>
    %c0_25 = arith.constant 0 : index
    %c0_26 = arith.constant 0 : index
    %72 = vector.load %arg8[%c0_25, %c0_26] : memref<1x32xf32, #tpu.memory_space<vmem>>, vector<1x32xf32>
    %c0_27 = arith.constant 0 : index
    %c0_28 = arith.constant 0 : index
    %73 = vector.load %arg9[%c0_27, %c0_28] : memref<1x32xf32, #tpu.memory_space<vmem>>, vector<1x32xf32>
    %cst_29 = arith.constant dense<0.000000e+00> : vector<8xf32>
    %74 = vector.multi_reduction <add>, %71, %cst_29 [1] : vector<8x32xf32> to vector<8xf32>
    %75 = vector.shape_cast %74 : vector<8xf32> to vector<8x1xf32>
    %cst_30 = arith.constant 3.200000e+01 : f32
    %76 = vector.broadcast %cst_30 : f32 to vector<8x1xf32>
    %77 = arith.divf %75, %76 : vector<8x1xf32>
    %78 = vector.broadcast %77 : vector<8x1xf32> to vector<8x32xf32>
    %79 = arith.subf %71, %78 : vector<8x32xf32>
    %80 = arith.mulf %79, %79 : vector<8x32xf32>
    %cst_31 = arith.constant dense<0.000000e+00> : vector<8xf32>
    %81 = vector.multi_reduction <add>, %80, %cst_31 [1] : vector<8x32xf32> to vector<8xf32>
    %82 = vector.shape_cast %81 : vector<8xf32> to vector<8x1xf32>
    %cst_32 = arith.constant 3.200000e+01 : f32
    %83 = vector.broadcast %cst_32 : f32 to vector<8x1xf32>
    %84 = arith.divf %82, %83 : vector<8x1xf32>
    %85 = vector.broadcast %77 : vector<8x1xf32> to vector<8x32xf32>
    %86 = arith.subf %71, %85 : vector<8x32xf32>
    %cst_33 = arith.constant 9.99999974E-6 : f32
    %87 = vector.broadcast %cst_33 : f32 to vector<8x1xf32>
    %88 = arith.addf %84, %87 : vector<8x1xf32>
    %89 = math.rsqrt %88 : vector<8x1xf32>
    %90 = vector.broadcast %89 : vector<8x1xf32> to vector<8x32xf32>
    %91 = arith.mulf %86, %90 : vector<8x32xf32>
    %92 = vector.broadcast %72 : vector<1x32xf32> to vector<8x32xf32>
    %93 = arith.mulf %91, %92 : vector<8x32xf32>
    %94 = vector.broadcast %73 : vector<1x32xf32> to vector<8x32xf32>
    %95 = arith.addf %93, %94 : vector<8x32xf32>
    %96 = arith.truncf %95 : vector<8x32xf32> to vector<8x32xbf16>
    %c0_34 = arith.constant 0 : index
    %c0_35 = arith.constant 0 : index
    %97 = vector.load %arg10[%c0_34, %c0_35] : memref<32x128xbf16, #tpu.memory_space<vmem>>, vector<32x128xbf16>
    %cst_36 = arith.constant dense<0.000000e+00> : vector<8x128xf32>
    %98 = tpu.matmul %96, %97, %cst_36 {dimension_numbers = #tpu.dot_dimension_numbers<[1], [0], [0], [1], [0, 0, 1, 1], [], []>} : vector<8x32xbf16>, vector<32x128xbf16>, vector<8x128xf32> -> vector<8x128xf32>
    %c0_37 = arith.constant 0 : index
    %c0_38 = arith.constant 0 : index
    %99 = vector.load %arg11[%c0_37, %c0_38] : memref<1x128xf32, #tpu.memory_space<vmem>>, vector<1x128xf32>
    %100 = vector.broadcast %99 : vector<1x128xf32> to vector<8x128xf32>
    %101 = arith.addf %98, %100 : vector<8x128xf32>
    %cst_39 = arith.constant 8.510000e-01 : f32
    %102 = vector.broadcast %cst_39 : f32 to vector<8x128xf32>
    %103 = arith.mulf %102, %101 : vector<8x128xf32>
    %104 = math.tanh %103 : vector<8x128xf32>
    %cst_40 = arith.constant 1.000000e+00 : f32
    %105 = vector.broadcast %cst_40 : f32 to vector<8x128xf32>
    %106 = arith.addf %104, %105 : vector<8x128xf32>
    %cst_41 = arith.constant 5.000000e-01 : f32
    %107 = vector.broadcast %cst_41 : f32 to vector<8x128xf32>
    %108 = arith.mulf %107, %106 : vector<8x128xf32>
    %109 = arith.mulf %101, %108 : vector<8x128xf32>
    %110 = arith.truncf %109 : vector<8x128xf32> to vector<8x128xbf16>
    %c0_42 = arith.constant 0 : index
    %c0_43 = arith.constant 0 : index
    %111 = vector.load %arg12[%c0_42, %c0_43] : memref<128x32xbf16, #tpu.memory_space<vmem>>, vector<128x32xbf16>
    %cst_44 = arith.constant dense<0.000000e+00> : vector<8x32xf32>
    %112 = tpu.matmul %110, %111, %cst_44 {dimension_numbers = #tpu.dot_dimension_numbers<[1], [0], [0], [1], [0, 0, 1, 1], [], []>} : vector<8x128xbf16>, vector<128x32xbf16>, vector<8x32xf32> -> vector<8x32xf32>
    %c0_45 = arith.constant 0 : index
    %c0_46 = arith.constant 0 : index
    %113 = vector.load %arg13[%c0_45, %c0_46] : memref<1x32xf32, #tpu.memory_space<vmem>>, vector<1x32xf32>
    %114 = vector.broadcast %113 : vector<1x32xf32> to vector<8x32xf32>
    %115 = arith.addf %112, %114 : vector<8x32xf32>
    %116 = arith.addf %71, %115 : vector<8x32xf32>
    %117 = vector.shape_cast %116 : vector<8x32xf32> to vector<1x8x32xf32>
    %c0_47 = arith.constant 0 : index
    %c0_48 = arith.constant 0 : index
    %c0_49 = arith.constant 0 : index
    %118 = vector.load %arg14[%c0_47, %c0_48, %c0_49] : memref<1x8x32xf32, #tpu.memory_space<vmem>>, vector<1x8x32xf32>
    tpu.vector_store %arg14[%c0_47, %c0_48, %c0_49], %117 {strides = array<i32>} : memref<1x8x32xf32, #tpu.memory_space<vmem>>, vector<1x8x32xf32>,
    return
  }
  func.func @transform_0(%arg0: i32) -> (i32, i32, i32) {
    %c0_i32 = arith.constant 0 : i32
    %c0_i32_0 = arith.constant 0 : i32
    %c0_i32_1 = arith.constant 0 : i32
    return %arg0, %c0_i32, %c0_i32_0 : i32, i32, i32
  }
  func.func @transform_1(%arg0: i32) -> (i32, i32) {
    %c0_i32 = arith.constant 0 : i32
    %c0_i32_0 = arith.constant 0 : i32
    %c0_i32_1 = arith.constant 0 : i32
    return %c0_i32, %c0_i32_0 : i32, i32
  }
  func.func @transform_2(%arg0: i32) -> (i32, i32) {
    %c0_i32 = arith.constant 0 : i32
    %c0_i32_0 = arith.constant 0 : i32
    %c0_i32_1 = arith.constant 0 : i32
    return %c0_i32, %c0_i32_0 : i32, i32
  }
  func.func @transform_3(%arg0: i32) -> (i32, i32) {
    %c0_i32 = arith.constant 0 : i32
    %c0_i32_0 = arith.constant 0 : i32
    %c0_i32_1 = arith.constant 0 : i32
    return %c0_i32, %c0_i32_0 : i32, i32
  }
  func.func @transform_4(%arg0: i32) -> (i32, i32) {
    %c0_i32 = arith.constant 0 : i32
    %c0_i32_0 = arith.constant 0 : i32
    %c0_i32_1 = arith.constant 0 : i32
    return %c0_i32, %c0_i32_0 : i32, i32
  }
  func.func @transform_5(%arg0: i32) -> (i32, i32) {
    %c0_i32 = arith.constant 0 : i32
    %c0_i32_0 = arith.constant 0 : i32
    %c0_i32_1 = arith.constant 0 : i32
    return %c0_i32, %c0_i32_0 : i32, i32
  }
  func.func @transform_6(%arg0: i32) -> (i32, i32) {
    %c0_i32 = arith.constant 0 : i32
    %c0_i32_0 = arith.constant 0 : i32
    %c0_i32_1 = arith.constant 0 : i32
    return %c0_i32, %c0_i32_0 : i32, i32
  }
  func.func @transform_7(%arg0: i32) -> (i32, i32) {
    %c0_i32 = arith.constant 0 : i32
    %c0_i32_0 = arith.constant 0 : i32
    %c0_i32_1 = arith.constant 0 : i32
    return %c0_i32, %c0_i32_0 : i32, i32
  }
  func.func @transform_8(%arg0: i32) -> (i32, i32) {
    %c0_i32 = arith.constant 0 : i32
    %c0_i32_0 = arith.constant 0 : i32
    %c0_i32_1 = arith.constant 0 : i32
    return %c0_i32, %c0_i32_0 : i32, i32
  }
  func.func @transform_9(%arg0: i32) -> (i32, i32) {
    %c0_i32 = arith.constant 0 : i32
    %c0_i32_0 = arith.constant 0 : i32
    %c0_i32_1 = arith.constant 0 : i32
    return %c0_i32, %c0_i32_0 : i32, i32
  }
  func.func @transform_10(%arg0: i32) -> (i32, i32) {
    %c0_i32 = arith.constant 0 : i32
    %c0_i32_0 = arith.constant 0 : i32
    %c0_i32_1 = arith.constant 0 : i32
    return %c0_i32, %c0_i32_0 : i32, i32
  }
  func.func @transform_11(%arg0: i32) -> (i32, i32) {
    %c0_i32 = arith.constant 0 : i32
    %c0_i32_0 = arith.constant 0 : i32
    %c0_i32_1 = arith.constant 0 : i32
    return %c0_i32, %c0_i32_0 : i32, i32
  }
  func.func @transform_12(%arg0: i32) -> (i32, i32) {
    %c0_i32 = arith.constant 0 : i32
    %c0_i32_0 = arith.constant 0 : i32
    %c0_i32_1 = arith.constant 0 : i32
    return %c0_i32, %c0_i32_0 : i32, i32
  }
  func.func @transform_13(%arg0: i32) -> (i32, i32, i32) {
    %c0_i32 = arith.constant 0 : i32
    %c0_i32_0 = arith.constant 0 : i32
    %c0_i32_1 = arith.constant 0 : i32
    return %arg0, %c0_i32, %c0_i32_0 : i32, i32, i32
  }
}

</mosaic_0001>

<bundles_post_ra>
// kernel: tpu_custom_call.1
= control target key start
LH: loop header
LB: loop body
LE: loop exit
PB: predicated region body
PF: predicated region fallthrough
CT: control target
= control target key end

     0   :  { %s2702_s0 = inlined_call_operand.vmem [shape: f32[2,8,32], index: 0, kind: input, shape index: {}]   ;;  %s2703_s1 = inlined_call_operand.vmem [shape: f32[1,32], index: 1, kind: input, shape index: {}]   ;;  %s2704_s2 = inlined_call_operand.vmem [shape: f32[1,32], index: 2, kind: input, shape index: {}]   ;;  %s2705_s3 = inlined_call_operand.vmem [shape: bf16[32,96], index: 3, kind: input, shape index: {}]   ;;  %s2706_s4 = inlined_call_operand.vmem [shape: f32[1,96], index: 4, kind: input, shape index: {}]   ;;  %s2707_s5 = inlined_call_operand.vmem [shape: bf16[32,32], index: 5, kind: input, shape index: {}]   ;;  %s2708_s6 = inlined_call_operand.vmem [shape: f32[1,32], index: 6, kind: input, shape index: {}]   ;;  %s2709_s7 = inlined_call_operand.vmem [shape: f32[1,32], index: 7, kind: input, shape index: {}]   ;;  %s2710_s8 = inlined_call_operand.vmem [shape: f32[1,32], index: 8, kind: input, shape index: {}]   ;;  %s2711_s9 = inlined_call_operand.vmem [shape: bf16[32,128], index: 9, kind: input, shape index: {}]   ;;  %s2712_s10 = inlined_call_operand.vmem [shape: f32[1,128], index: 10, kind: input, shape index: {}]   ;;  %s2713_s11 = inlined_call_operand.vmem [shape: bf16[128,32], index: 11, kind: input, shape index: {}]   ;;  %s2714_s12 = inlined_call_operand.vmem [shape: f32[1,32], index: 12, kind: input, shape index: {}]   ;;  %s2715_s13 = inlined_call_operand.hbm [shape: f32[2,8,32], index: 13, kind: output, shape index: {}]  }
   0x1   :  { %2716 = sst [smem:[#allocation5_spill]] %s2702_s0 }
   0x2   :  { %2717 = sst [smem:[#allocation6_spill]] %s2703_s1 }
   0x3   :  { %2718 = sst [smem:[#allocation7_spill]] %s2704_s2 }
   0x4   :  { %18 = vsyncpa [#allocation3], 0 }
   0x5   :  { %20 = vsyncpa [#allocation3 + $0x1], 0  ;;  %s2336_s25 = smov 0   ;;  %s2338_s26 = smov 0  }
   0x6   :  { %s2340_s27 = smov 0   ;;  %s2342_s28 = smov 0  }
   0x7 LB: > { %s2357_s29 = sadd.s32 4294967295, %s2251_s28   ;;  %s1925_s30 = sadd.s32 4294967294, %s2251_s28   ;;  %s2251_s28 = sphi %s2342_s28, %s2727_s28   ;;  %s2247_s27 = sphi %s2340_s27, %s2726_s27   ;;  %s2243_s26 = sphi %s2338_s26, %s2725_s26   ;;  %s2239_s25 = sphi %s2336_s25, %s2724_s25  }
   0x8   : > { %s2361_s14 = sadd.s32 1, %s2251_s28   ;;  %s311_s15 = sadd.s32 1, %s2247_s27 }
   0x9   : > { %s308_s16 = ssub.s32 %s2251_s28, %s2361_s14  ;;  %p321_p0 = scmp.ne.s32.totalorder %s2247_s27, %s2243_s26 }
   0xa   : > { %p309_p1 = scmp.eq.s32.totalorder %s308_s16, 0  ;;  %p322_p2 = scmp.eq.s32.totalorder %s2357_s29, 1 }
   0xb   : > { %p327_p3 = scmp.ne.s32.totalorder %s2243_s26, %s2239_s25  ;;  %p328_p4 = scmp.eq.s32.totalorder %s1925_s30, 1 }
   0xc   : > { %s2372_s17 = scalar_select %p309_p1, %s2247_s27, %s311_s15  }
   0xd   : > { %p2374_p5 = por %p322_p2, %p321_p0  ;;  %p2378_p6 = por %p328_p4, %p327_p3 }
   0xe   : > { %p1928_p7 = scmp.ge.s32.totalorder %s2251_s28, 1  ;;  %p389_p8 = scmp.lt.s32.totalorder %s2251_s28, 3 }
  0x10   : > { %p390_p9 = pnand %p1928_p7, %p389_p8 }
  0x11   : > { %p432_p10 = scmp.lt.s32.totalorder (!%p390_p9), %s2357_s29, 1  ;;  %vm440_vm0 = vcmask (!%p390_p9), 261120   ;;  %s2721_s0 = sld [smem:[#allocation5_spill]] (!%p390_p9)  ;;  %v2153_v7 = vld [vmem:[%s2705_s3] sm:$0xff] (!%p390_p9)   ;;  %v2253_v8 = vmov (!%p390_p9), 0.0   ;;  %vm2254_vm1 = vmmov (!%p390_p9), 0   ;;  %v552_v33 = vlaneseq (!%p390_p9) }
  0x12   : > { %393 = sbr.rel (%p390_p9) target bundleno = 2763 (0xacb), region = 72  ;;  %2010 = vmatprep.subr.bf16.mxu0 (!%p390_p9), %v2253_v8  ;;  %2014 = vmatprep.mubr.msk.bf16.mxu0 (!%p390_p9), %vm2254_vm1, %v2253_v8  ;;  %v2154_v9 = vld [vmem:[%s2705_s3 + $0x8] sm:$0xff] (!%p390_p9)   ;;  %s2722_s1 = sld [smem:[#allocation6_spill]] (!%p390_p9)  ;;  %v1933_v20 = vld [vmem:[%s2706_s4] ss:$0 sm:$0xff] (!%p390_p9)  ;;  %vm998_vm2 = vcmask (!%p390_p9), 64512  }
  0x13   : > { %2011 = vmatpush3.bf16.msra.mxu0 (!%p390_p9), %v2153_v7  ;;  %2030 = vmatprep.subr.bf16.mxu1 (!%p390_p9), %v2253_v8  ;;  %s2723_s2 = sld [smem:[#allocation7_spill]] (!%p390_p9)  ;;  %s2255_s16 = smov (!%p390_p9), 104   ;;  %v2259_v31 = vmov (!%p390_p9), 1983009808   ;;  %v2260_v35 = vmov (!%p390_p9), 1934713408  }
  0x14   : > { %2012 = vmatprep.subr.bf16.mxu0 (!%p390_p9), %v2253_v8  ;;  %2032 = vmatprep.mubr.msk.bf16.mxu1 (!%p390_p9), %vm2254_vm1, %v2253_v8  ;;  %s2258_s22 = smov (!%p390_p9), 96   ;;  %v550_v32 = vunpack.c.l.s4 (!%p390_p9), %v2259_v31  ;;  %v582_v36 = vunpack.c.l.s4 (!%p390_p9), %v2260_v35  ;;  %v553_v38 = vshrl.u32 (!%p390_p9), %v552_v33, 7  ;;  %s2261_s23 = smov (!%p390_p9), 64   ;;  %vm1234_vm3 = vcmask (!%p390_p9), 1043456  }
  0x15   : > { %vm1565_vm4 = vcmask (!%p390_p9), 130048   ;;  %vm1567_vm5 = vcmask (!%p390_p9), 195584  }
  0x16   : > { %v551_v37 = vunpack.c.0.s8 (!%p390_p9), %v550_v32  ;;  %v583_v40 = vunpack.c.0.s8 (!%p390_p9), %v582_v36 }
  0x17   : > { %2013 = vmatpush3.bf16.msra.mxu0 (!%p390_p9), %v2154_v9 }
  0x18   : > { %2018 = vmatprep.subr.bf16.mxu0 (!%p390_p9), %v2253_v8  ;;  %v1931_v14 = vld [vmem:[%s2722_s1] ss:$0 sm:$0xff] (!%p390_p9)  ;;  %v2442_v41 = vsub.s32 (!%p390_p9), %v551_v37, %v553_v38  ;;  %v2444_v47 = vsub.s32 (!%p390_p9), %v583_v40, %v553_v38 }
  0x19   : > { %s433_s20 = scalar_select %p432_p10, %s2357_s29, 1  ;;  %v1932_v16 = vld [vmem:[%s2723_s2] ss:$0 sm:$0xff] }
  0x1b   : > { %s1930_s21 = sshll.u32 %s433_s20, 3  ;;  %s2256_s20 = smov 120  }
  0x1c   : > { %s435_s24 = scalar_lea.vmem %s2721_s0, %s1930_s21  ;;  %s2257_s21 = smov 112  }
  0x1d   : > { %v2389_v0 = vld [vmem:[%s435_s24] sm:$0xff] }
  0x1e   : > { %v441_v1 = vsel %vm440_vm0, %v2389_v0, 0.0 }
  0x1f   : > { %442 = vadd.xlane.f32.xlu0 %v441_v1 }
  0xac   : > { %v443_v2 = vpop.xlane.xlu0 %442 }
  0xad   : > { %v445_v3 = vmul.f32 0.03125, %v443_v2 }
  0xaf   : > { %v446_v4 = vsub.f32 %v2389_v0, %v445_v3 }
  0xb1   : > { %v447_v5 = vmul.f32 %v446_v4, %v446_v4 }
  0xb3   : > { %v448_v6 = vsel %vm440_vm0, %v447_v5, 0.0 }
  0xb4   : > { %449 = vadd.xlane.f32.xlu0 %v448_v6 }
 0x141   : > { %v450_v10 = vpop.xlane.xlu0 %449 }
 0x142   : > { %v451_v11 = vmul.f32 0.03125, %v450_v10 }
 0x144   : > { %v452_v12 = vadd.f32 1e-05, %v451_v11 }
 0x146   : > { %2167 = vrsqrt.f32 %v452_v12 }
 0x150   : > { %v2168_v13 = vpop.eup %2167 }
 0x151   : > { %v454_v15 = vmul.f32 %v2168_v13, %v446_v4 }
 0x153   : > { %v461_v17 = vmul.f32 %v1931_v14, %v454_v15 }
 0x155   : > { %v468_v18 = vadd.f32 %v1932_v16, %v461_v17 }
 0x157   : > { %v469_v19 = vpack.c.bf16 %v468_v18, %v468_v18 }
 0x159   : > { %2015 = vmatmul.mubr.msk.bf16.vlgmr.msra.gmra.mrb[0].mxu0 %vm440_vm0, %v469_v19 }
 0x15a   : > { %2020 = vmatprep.mubr.msk.bf16.mxu0 %vm2254_vm1, %v2253_v8 }
 0x22c   : > { %v530_v21 = vpop.f32.mrb[0].mxu0 }
 0x22d   : > { %v2421_v22 = vadd.f32 %v1933_v20, %v530_v21  ;;  %v2016_v23 = vpop.f32.mrb[1].mxu0 }
 0x22e   : > { %v533_v24 = vpop.f32.mrb[2].mxu0 }
 0x22f   : > { %692 = vrot.lane.b32.xlu0 %v2421_v22, %s2255_s16  ;;  %688 = vrot.lane.b32.xlu1 %v2421_v22, %s2256_s20  ;;  %v2017_v25 = vpop.f32.mrb[3].mxu0  ;;  %v2426_v26 = vmul.f32 0.35355338, %v2421_v22 }
 0x233   : > { %690 = vrot.lane.b32.xlu1 %v2421_v22, %s2257_s21  ;;  %544 = vrot.lane.b32.xlu0 %v2426_v26, %s2255_s16  ;;  %s429_s16 = sand.u32 1, %s2243_s26  }
 0x237   : > { %694 = vrot.lane.b32.xlu1 %v2421_v22, %s2258_s22 }
 0x2a1   : > { %v2431_v27 = vpop.permute.xlu1 %688  ;;  %v2437_v29 = vpop.permute.xlu0 %692 }
 0x2a2   : > { %696 = vrot.lane.b32.xlu1 %v2431_v27, %s2258_s22 }
 0x2a5   : > { %v2434_v28 = vpop.permute.xlu1 %690  ;;  %v545_v57 = vpop.permute.xlu0 %544 }
 0x2a6   : > { %698 = vrot.lane.b32.xlu1 %v2434_v28, %s2258_s22 }
 0x2a9   : > { %v695_v30 = vpop.permute.xlu1 %694 }
 0x2aa   : > { %700 = vrot.lane.b32.xlu1 %v2437_v29, %s2258_s22  ;;  %s2264_s22 = smov 24  }
 0x2ae   : > { %538 = vrot.lane.b32.xlu1 %v2426_v26, %s2256_s20  ;;  %s2262_s20 = smov 16  }
 0x2b2   : > { %541 = vrot.lane.b32.xlu1 %v2426_v26, %s2257_s21  ;;  %s2263_s21 = smov 8  }
 0x314   : > { %v697_v34 = vpop.permute.xlu1 %696 }
 0x318   : > { %v699_v39 = vpop.permute.xlu1 %698 }
 0x319   : > { %v706_v42 = vcombine.low %v695_v30, %v699_v39  ;;  %v707_v43 = vcombine.high %v695_v30, %v699_v39 }
 0x31b   : > { %v714_v48 = vrot.slane %v706_v42, %v2442_v41  ;;  %v721_v49 = vrot.slane %v707_v43, %v2442_v41 }
 0x31c   : > { %v701_v44 = vpop.permute.xlu1 %700 }
 0x31d   : > { %v722_v45 = vcombine.low %v697_v34, %v701_v44  ;;  %v723_v46 = vcombine.high %v697_v34, %v701_v44 }
 0x31f   : > { %v730_v50 = vrot.slane %v722_v45, %v2442_v41  ;;  %v737_v51 = vrot.slane %v723_v46, %v2442_v41 }
 0x320   : > { %v539_v52 = vpop.permute.xlu1 %538 }
 0x321   : > { %v738_v53 = vcombine.low %v714_v48, %v730_v50  ;;  %v739_v54 = vcombine.high %v714_v48, %v730_v50  ;;  %v754_v55 = vcombine.low %v721_v49, %v737_v51  ;;  %v755_v56 = vcombine.high %v721_v49, %v737_v51 }
 0x322   : > { %v563_v62 = vcombine.low %v539_v52, %v545_v57  ;;  %v564_v63 = vcombine.high %v539_v52, %v545_v57 }
 0x323   : > { %v746_v58 = vrot.slane %v738_v53, %v2444_v47  ;;  %v753_v59 = vrot.slane %v739_v54, %v2444_v47  ;;  %v762_v60 = vrot.slane %v754_v55, %v2444_v47  ;;  %v769_v61 = vrot.slane %v755_v56, %v2444_v47 }
 0x324   : > { %v542_v1 = vpop.permute.xlu1 %541  ;;  %v571_v13 = vrot.slane %v563_v62, %v2442_v41  ;;  %v578_v14 = vrot.slane %v564_v63, %v2442_v41 }
 0x325   : > { %v774_v2 = vcombine.low %v746_v58, %v753_v59  ;;  %v1939_v3 = vcombine.high %v746_v58, %v753_v59  ;;  %v790_v4 = vcombine.low %v762_v60, %v769_v61  ;;  %v1940_v5 = vcombine.high %v762_v60, %v769_v61 }
 0x326   : > { %v547_v6 = vcombine.low %v2426_v26, %v542_v1  ;;  %v548_v7 = vcombine.high %v2426_v26, %v542_v1 }
 0x327   : > { %v781_v9 = vrot.slane %v774_v2, %v2442_v41  ;;  %v789_v10 = vrot.slane %v1939_v3, %v2442_v41  ;;  %v797_v11 = vrot.slane %v790_v4, %v2442_v41  ;;  %v805_v12 = vrot.slane %v1940_v5, %v2442_v41 }
 0x328   : > { %v555_v15 = vrot.slane %v547_v6, %v2442_v41  ;;  %v562_v16 = vrot.slane %v548_v7, %v2442_v41 }
 0x329   : > { %v806_v17 = vcombine.low %v781_v9, %v789_v10  ;;  %v822_v18 = vcombine.low %v797_v11, %v805_v12  ;;  %v807_v19 = vcombine.high %v781_v9, %v789_v10  ;;  %v823_v20 = vcombine.high %v797_v11, %v805_v12 }
 0x32a   : > { %v579_v21 = vcombine.low %v555_v15, %v571_v13  ;;  %v580_v23 = vcombine.high %v555_v15, %v571_v13  ;;  %v595_v24 = vcombine.low %v562_v16, %v578_v14  ;;  %v596_v25 = vcombine.high %v562_v16, %v578_v14 }
 0x32b   : > { %v814_v26 = vrot.slane %v806_v17, %v2444_v47  ;;  %v830_v30 = vrot.slane %v822_v18, %v2444_v47  ;;  %v821_v31 = vrot.slane %v807_v19, %v2444_v47  ;;  %v837_v32 = vrot.slane %v823_v20, %v2444_v47 }
 0x32c   : > { %v587_v33 = vrot.slane %v579_v21, %v2444_v47  ;;  %v594_v34 = vrot.slane %v580_v23, %v2444_v47  ;;  %v603_v35 = vrot.slane %v595_v24, %v2444_v47  ;;  %v610_v36 = vrot.slane %v596_v25, %v2444_v47 }
 0x32d   : > { %v838_v37 = vcombine.low %v814_v26, %v830_v30  ;;  %v840_v38 = vcombine.low %v821_v31, %v837_v32  ;;  %v839_v53 = vcombine.high %v814_v26, %v830_v30  ;;  %v841_v5 = vcombine.high %v821_v31, %v837_v32 }
 0x32e   : > { %v615_v39 = vcombine.low %v587_v33, %v594_v34  ;;  %v1937_v40 = vcombine.high %v587_v33, %v594_v34  ;;  %v631_v42 = vcombine.low %v603_v35, %v610_v36  ;;  %v1938_v43 = vcombine.high %v603_v35, %v610_v36 }
 0x32f   : > { %v842_v44 = vpack.c.bf16 %v838_v37, %v838_v37  ;;  %v844_v45 = vpack.c.bf16 %v840_v38, %v840_v38  ;;  %v843_v63 = vpack.c.bf16 %v839_v53, %v839_v53  ;;  %v845_v7 = vpack.c.bf16 %v841_v5, %v841_v5 }
 0x330   : > { %v622_v46 = vrot.slane %v615_v39, %v2442_v41  ;;  %v630_v48 = vrot.slane %v1937_v40, %v2442_v41  ;;  %v638_v49 = vrot.slane %v631_v42, %v2442_v41  ;;  %v646_v50 = vrot.slane %v1938_v43, %v2442_v41 }
 0x331   : > { %v1003_v51 = vsel %vm998_vm2, %v842_v44, 0  ;;  %v1095_v52 = vsel %vm998_vm2, %v844_v45, 0  ;;  %v1049_v4 = vsel %vm998_vm2, %v843_v63, 0  ;;  %v1141_v10 = vsel %vm998_vm2, %v845_v7, 0 }
 0x332   : > { %v647_v54 = vcombine.low %v622_v46, %v630_v48  ;;  %v663_v55 = vcombine.low %v638_v49, %v646_v50  ;;  %2019 = vmatpush3.bf16.xpose.msra.mxu0 %v1003_v51  ;;  %2031 = vmatpush3.bf16.xpose.msra.mxu1 %v1095_v52  ;;  %v648_v56 = vcombine.high %v622_v46, %v630_v48 }
 0x333   : > { %2024 = vmatprep.subr.bf16.mxu0 %v2253_v8  ;;  %v664_v57 = vcombine.high %v638_v49, %v646_v50  ;;  %2042 = vmatprep.subr.bf16.mxu1 %v2253_v8 }
 0x334   : > { %v655_v58 = vrot.slane %v647_v54, %v2444_v47  ;;  %v671_v59 = vrot.slane %v663_v55, %v2444_v47  ;;  %v662_v60 = vrot.slane %v648_v56, %v2444_v47 }
 0x335   : > { %v678_v61 = vrot.slane %v664_v57, %v2444_v47 }
 0x336   : > { %v679_v62 = vcombine.low %v655_v58, %v671_v59  ;;  %v680_v6 = vcombine.high %v655_v58, %v671_v59 }
 0x337   : > { %v681_v1 = vcombine.low %v662_v60, %v678_v61  ;;  %v682_v11 = vcombine.high %v662_v60, %v678_v61 }
 0x338   : > { %v683_v2 = vpack.c.bf16 %v679_v62, %v679_v62  ;;  %v684_v9 = vpack.c.bf16 %v680_v6, %v680_v6 }
 0x339   : > { %v685_v3 = vpack.c.bf16 %v681_v1, %v681_v1  ;;  %v686_v12 = vpack.c.bf16 %v682_v11, %v682_v11 }
 0x33a   : > { %2021 = vmatmul.mubr.msk.bf16.vlgmr.msra.gmra.mrb[4].mxu0 %vm998_vm2, %v683_v2 }
 0x33b   : > { %2033 = vmatmul.mubr.msk.bf16.vlgmr.msra.gmra.mrb[0].mxu1 %vm998_vm2, %v685_v3  ;;  %2025 = vmatpush3.bf16.xpose.msra.mxu0 %v1049_v4 }
 0x33c   : > { %2026 = vmatprep.mubr.msk.bf16.mxu0 %vm2254_vm1, %v2253_v8  ;;  %2036 = vmatprep.subr.bf16.mxu0 %v2253_v8 }
 0x33d   : > { %2044 = vmatprep.mubr.msk.bf16.mxu1 %vm2254_vm1, %v2253_v8 }
 0x342   : > { %2027 = vmatmul.mubr.msk.bf16.vlgmr.msra.gmra.mrb[8].mxu0 %vm998_vm2, %v684_v9 }
 0x343   : > { %2037 = vmatpush3.bf16.xpose.msra.mxu0 %v1141_v10  ;;  %2038 = vmatprep.mubr.msk.bf16.mxu0 %vm2254_vm1, %v2253_v8 }
 0x344   : > { %2048 = vmatprep.subr.bf16.mxu0 %v2253_v8 }
 0x34a   : > { %2039 = vmatmul.mubr.msk.bf16.vlgmr.msra.gmra.mrb[12].mxu0 %vm998_vm2, %v686_v12 }
 0x34b   : > { %2050 = vmatprep.mubr.msk.bf16.mxu0 %vm2254_vm1, %v2253_v8 }
 0x40d   : > { %v1039_v13 = vpop.f32.mrb[4].mxu0 }
 0x40e   : > { %v1131_v14 = vpop.f32.mrb[0].mxu1  ;;  %v2022_v15 = vpop.f32.mrb[5].mxu0  ;;  %v1183_v16 = vsel %vm998_vm2, %v1039_v13, -inf }
 0x40f   : > { %v2034_v17 = vpop.f32.mrb[1].mxu1  ;;  %v1189_v18 = vsel %vm998_vm2, %v1131_v14, -inf  ;;  %1184 = vmax.xlane.f32.xlu1 %v1183_v16  ;;  %v1042_v19 = vpop.f32.mrb[6].mxu0 }
 0x410   : > { %1190 = vmax.xlane.f32.xlu0 %v1189_v18  ;;  %v1134_v20 = vpop.f32.mrb[2].mxu1  ;;  %v2023_v21 = vpop.f32.mrb[7].mxu0 }
 0x411   : > { %v2035_v23 = vpop.f32.mrb[3].mxu1 }
 0x415   : > { %v1085_v24 = vpop.f32.mrb[8].mxu0 }
 0x416   : > { %v2028_v25 = vpop.f32.mrb[9].mxu0  ;;  %v1186_v26 = vsel %vm998_vm2, %v1085_v24, -inf }
 0x417   : > { %1187 = vmax.xlane.f32.xlu0 %v1186_v26  ;;  %v1088_v30 = vpop.f32.mrb[10].mxu0 }
 0x418   : > { %v2029_v31 = vpop.f32.mrb[11].mxu0 }
 0x41d   : > { %v1177_v32 = vpop.f32.mrb[12].mxu0 }
 0x41e   : > { %v2040_v33 = vpop.f32.mrb[13].mxu0  ;;  %v1192_v34 = vsel %vm998_vm2, %v1177_v32, -inf }
 0x41f   : > { %1193 = vmax.xlane.f32.xlu1 %v1192_v34  ;;  %v1180_v35 = vpop.f32.mrb[14].mxu0 }
 0x420   : > { %v2041_v36 = vpop.f32.mrb[15].mxu0 }
 0x42d   : > { %846 = vrot.lane.b32.xlu0 %v2421_v22, %s2261_s23 }
 0x430   : > { %848 = vrot.lane.b32.xlu1 %v2431_v27, %s2261_s23 }
 0x49c   : > { %v1185_v37 = vpop.xlane.xlu1 %1184 }
 0x49d   : > { %v1195_v38 = vsub.f32 %v1039_v13, %v1185_v37  ;;  %v1191_v40 = vpop.xlane.xlu0 %1190 }
 0x49e   : > { %v1197_v51 = vsub.f32 %v1131_v14, %v1191_v40 }
 0x49f   : > { %v1199_v39 = vmul.f32 1.442695, %v1195_v38 }
 0x4a0   : > { %v1203_v52 = vmul.f32 1.442695, %v1197_v51 }
 0x4a1   : > { %2169 = vpow2.f32 %v1199_v39 }
 0x4a4   : > { %v1188_v42 = vpop.xlane.xlu0 %1187 }
 0x4a5   : > { %v1196_v43 = vsub.f32 %v1085_v24, %v1188_v42 }
 0x4a7   : > { %v1201_v44 = vmul.f32 1.442695, %v1196_v43 }
 0x4a9   : > { %2171 = vpow2.f32 %v1201_v44 }
 0x4ab   : > { %v2506_v45 = vpop.eup %2169 }
 0x4ac   : > { %v1207_v46 = vsel %vm998_vm2, %v2506_v45, 0.0  ;;  %v1194_v27 = vpop.xlane.xlu1 %1193 }
 0x4ad   : > { %1208 = vadd.xlane.f32.xlu0 %v1207_v46  ;;  %v1198_v49 = vsub.f32 %v1177_v32, %v1194_v27 }
 0x4af   : > { %v1205_v50 = vmul.f32 1.442695, %v1198_v49 }
 0x4b0   : > { %v849_v57 = vpop.permute.xlu1 %848 }
 0x4b1   : > { %2173 = vpow2.f32 %v1205_v50 }
 0x4b2   : > { %2175 = vpow2.f32 %v1203_v52 }
 0x4b3   : > { %v2510_v48 = vpop.eup %2171 }
 0x4b4   : > { %v1210_v22 = vsel %vm998_vm2, %v2510_v48, 0.0 }
 0x4b5   : > { %1211 = vadd.xlane.f32.xlu1 %v1210_v22 }
 0x4bb   : > { %v2516_v53 = vpop.eup %2173 }
 0x4bc   : > { %v1216_v54 = vsel %vm998_vm2, %v2516_v53, 0.0  ;;  %v2520_v55 = vpop.eup %2175 }
 0x4c3   : > { %852 = vrot.lane.b32.xlu0 %v2437_v29, %s2261_s23  ;;  %v1213_v29 = vsel %vm998_vm2, %v2520_v55, 0.0 }
 0x4c6   : > { %850 = vrot.lane.b32.xlu1 %v2434_v28, %s2261_s23  ;;  %v847_v28 = vpop.permute.xlu0 %846  ;;  %s1973_s23 = sshll.u32 %s2357_s29, 7  ;;  %s1853_s29 = scalar_lea.sflag [#allocation3], %s429_s16 }
 0x4c7   : > { %s2659_s1 = scalar_lea.hbm %s2715_s13, %s1973_s23 }
 0x4e2   : > { %1217 = vadd.xlane.f32.xlu0 %v1216_v54 }
 0x4ea   : > { %1214 = vadd.xlane.f32.xlu1 %v1213_v29 }
 0x53a   : > { %v1209_v56 = vpop.xlane.xlu0 %1208 }
 0x53b   : > { %2177 = vrcp.f32 %v1209_v56 }
 0x53e   : > { %v853_v58 = vpop.permute.xlu0 %852 }
 0x53f   : > { %v874_v60 = vcombine.low %v849_v57, %v853_v58  ;;  %v875_v61 = vcombine.high %v849_v57, %v853_v58 }
 0x541   : > { %v882_v2 = vrot.slane %v874_v60, %v2442_v41  ;;  %v889_v3 = vrot.slane %v875_v61, %v2442_v41 }
 0x542   : > { %v1212_v59 = vpop.xlane.xlu1 %1211 }
 0x543   : > { %2179 = vrcp.f32 %v1212_v59 }
 0x545   : > { %v2178_v31 = vpop.eup %2177 }
 0x546   : > { %v851_v62 = vpop.permute.xlu1 %850  ;;  %v1220_v42 = vmul.f32 %v2178_v31, %v2506_v45 }
 0x547   : > { %v858_v63 = vcombine.low %v847_v28, %v851_v62  ;;  %v859_v1 = vcombine.high %v847_v28, %v851_v62 }
 0x548   : > { %v1227_v51 = vpack.c.bf16 %v1220_v42, %v1220_v42 }
 0x549   : > { %v866_v4 = vrot.slane %v858_v63, %v2442_v41  ;;  %v873_v5 = vrot.slane %v859_v1, %v2442_v41 }
 0x54b   : > { %v890_v6 = vcombine.low %v866_v4, %v882_v2  ;;  %v891_v7 = vcombine.high %v866_v4, %v882_v2  ;;  %v906_v9 = vcombine.low %v873_v5, %v889_v3  ;;  %v907_v10 = vcombine.high %v873_v5, %v889_v3 }
 0x54d   : > { %v898_v11 = vrot.slane %v890_v6, %v2444_v47  ;;  %v905_v12 = vrot.slane %v891_v7, %v2444_v47  ;;  %v914_v13 = vrot.slane %v906_v9, %v2444_v47  ;;  %v921_v14 = vrot.slane %v907_v10, %v2444_v47  ;;  %v2180_v36 = vpop.eup %2179 }
 0x54e   : > { %v1222_v43 = vmul.f32 %v2180_v36, %v2510_v48 }
 0x54f   : > { %v926_v15 = vcombine.low %v898_v11, %v905_v12  ;;  %v1941_v16 = vcombine.high %v898_v11, %v905_v12  ;;  %v942_v17 = vcombine.low %v914_v13, %v921_v14  ;;  %v1942_v18 = vcombine.high %v914_v13, %v921_v14 }
 0x550   : > { %v1228_v52 = vpack.c.bf16 %v1222_v43, %v1222_v43 }
 0x551   : > { %v933_v19 = vrot.slane %v926_v15, %v2442_v41  ;;  %v941_v20 = vrot.slane %v1941_v16, %v2442_v41  ;;  %v949_v21 = vrot.slane %v942_v17, %v2442_v41  ;;  %v957_v23 = vrot.slane %v1942_v18, %v2442_v41 }
 0x553   : > { %v958_v24 = vcombine.low %v933_v19, %v941_v20  ;;  %v974_v25 = vcombine.low %v949_v21, %v957_v23  ;;  %v959_v26 = vcombine.high %v933_v19, %v941_v20  ;;  %v975_v30 = vcombine.high %v949_v21, %v957_v23 }
 0x555   : > { %v966_v32 = vrot.slane %v958_v24, %v2444_v47  ;;  %v982_v33 = vrot.slane %v974_v25, %v2444_v47  ;;  %v973_v34 = vrot.slane %v959_v26, %v2444_v47  ;;  %v989_v35 = vrot.slane %v975_v30, %v2444_v47  ;;  %v2155_v26 = vld [vmem:[%s2707_s5] sm:$0xff]  }
 0x557   : > { %v990_v37 = vcombine.low %v966_v32, %v982_v33  ;;  %v991_v38 = vcombine.high %v966_v32, %v982_v33  ;;  %v992_v39 = vcombine.low %v973_v34, %v989_v35  ;;  %v993_v40 = vcombine.high %v973_v34, %v989_v35 }
 0x559   : > { %v994_v44 = vpack.c.bf16 %v990_v37, %v990_v37  ;;  %v995_v46 = vpack.c.bf16 %v991_v38, %v991_v38  ;;  %v996_v49 = vpack.c.bf16 %v992_v39, %v992_v39  ;;  %v997_v50 = vpack.c.bf16 %v993_v40, %v993_v40  ;;  %v2156_v38 = vld [vmem:[%s2707_s5 + $0x8] sm:$0xff]  }
 0x55b   : > { %v1236_v22 = vsel %vm1234_vm3, %v994_v44, 0  ;;  %v1282_v27 = vsel %vm1234_vm3, %v995_v46, 0  ;;  %v1328_v45 = vsel %vm1234_vm3, %v996_v49, 0  ;;  %v1374_v48 = vsel %vm1234_vm3, %v997_v50, 0 }
 0x55c   : > { %2043 = vmatpush3.bf16.msra.mxu1 %v1236_v22  ;;  %2049 = vmatpush3.bf16.msra.mxu0 %v1282_v27 }
 0x55d   : > { %2054 = vmatprep.subr.bf16.mxu1 %v2253_v8  ;;  %2060 = vmatprep.subr.bf16.mxu0 %v2253_v8 }
 0x55f   : > { %2045 = vmatmul.mubr.msk.bf16.vlgmr.msra.gmra.mrb[4].mxu1 %vm998_vm2, %v1227_v51  ;;  %2051 = vmatmul.mubr.msk.bf16.vlgmr.msra.gmra.mrb[16].mxu0 %vm998_vm2, %v1228_v52 }
 0x560   : > { %2055 = vmatpush3.bf16.msra.mxu1 %v1328_v45  ;;  %2061 = vmatpush3.bf16.msra.mxu0 %v1374_v48 }
 0x561   : > { %2062 = vmatprep.mubr.msk.bf16.mxu0 %vm2254_vm1, %v2253_v8  ;;  %2056 = vmatprep.mubr.msk.bf16.mxu1 %vm2254_vm1, %v2253_v8 }
 0x562   : > { %2066 = vmatprep.subr.bf16.mxu1 %v2253_v8  ;;  %2074 = vmatprep.subr.bf16.mxu0 %v2253_v8 }
 0x56f   : > { %v1218_v54 = vpop.xlane.xlu0 %1217 }
 0x570   : > { %2181 = vrcp.f32 %v1218_v54 }
 0x577   : > { %v1215_v29 = vpop.xlane.xlu1 %1214 }
 0x578   : > { %2183 = vrcp.f32 %v1215_v29 }
 0x57a   : > { %v2182_v28 = vpop.eup %2181 }
 0x57b   : > { %v1226_v56 = vmul.f32 %v2182_v28, %v2516_v53 }
 0x57d   : > { %v1230_v57 = vpack.c.bf16 %v1226_v56, %v1226_v56 }
 0x57f   : > { %2063 = vmatmul.mubr.msk.bf16.vlgmr.msra.gmra.mrb[20].mxu0 %vm998_vm2, %v1230_v57 }
 0x580   : > { %2078 = vmatprep.mubr.msk.bf16.mxu0 %vm2254_vm1, %v2253_v8 }
 0x582   : > { %v2184_v58 = vpop.eup %2183 }
 0x583   : > { %v1224_v59 = vmul.f32 %v2184_v58, %v2520_v55 }
 0x585   : > { %v1229_v60 = vpack.c.bf16 %v1224_v59, %v1224_v59 }
 0x587   : > { %2057 = vmatmul.mubr.msk.bf16.vlgmr.msra.gmra.mrb[8].mxu1 %vm998_vm2, %v1229_v60  ;;  %v1953_v60 = vld [vmem:[%s2708_s6] ss:$0 sm:$0xff] }
 0x588   : > { %2070 = vmatprep.mubr.msk.bf16.mxu1 %vm2254_vm1, %v2253_v8  ;;  %2067 = vmatpush3.bf16.msra.mxu1 %v2155_v26  ;;  %v2164_v26 = vld [vmem:[%s2713_s11 + $0x28] sm:$0xff]  }
 0x589   : > { %2068 = vmatprep.subr.bf16.mxu1 %v2253_v8 }
 0x58c   : > { %2069 = vmatpush3.bf16.msra.mxu1 %v2156_v38 }
 0x58d   : > { %2082 = vmatprep.subr.bf16.mxu1 %v2253_v8 }
 0x632   : > { %v1272_v61 = vpop.f32.mrb[4].mxu1  ;;  %v1318_v62 = vpop.f32.mrb[16].mxu0 }
 0x633   : > { %v2046_v63 = vpop.f32.mrb[5].mxu1  ;;  %v2052_v1 = vpop.f32.mrb[17].mxu0 }
 0x634   : > { %v1275_v53 = vpop.f32.mrb[6].mxu1  ;;  %v1321_v2 = vpop.f32.mrb[18].mxu0 }
 0x635   : > { %v2047_v3 = vpop.f32.mrb[7].mxu1  ;;  %v2053_v4 = vpop.f32.mrb[19].mxu0 }
 0x652   : > { %v1410_v5 = vpop.f32.mrb[20].mxu0 }
 0x653   : > { %v1432_v6 = vcombine.low %v1318_v62, %v1410_v5  ;;  %v1433_v7 = vcombine.high %v1318_v62, %v1410_v5  ;;  %v2064_v9 = vpop.f32.mrb[21].mxu0 }
 0x654   : > { %v1413_v10 = vpop.f32.mrb[22].mxu0 }
 0x655   : > { %v2065_v55 = vpop.f32.mrb[23].mxu0  ;;  %v1440_v16 = vrot.slane %v1432_v6, %v2442_v41  ;;  %v1447_v17 = vrot.slane %v1433_v7, %v2442_v41  ;;  %v2157_v10 = vld [vmem:[%s2711_s9] sm:$0xff]  }
 0x656   : > { %2075 = vmatpush3.bf16.msra.mxu0 %v2157_v10  ;;  %v2159_v55 = vld [vmem:[%s2713_s11] sm:$0xff]  }
 0x657   : > { %2076 = vmatprep.subr.bf16.mxu0 %v2253_v8 }
 0x65a   : > { %v1364_v11 = vpop.f32.mrb[8].mxu1 }
 0x65b   : > { %v1416_v12 = vcombine.low %v1272_v61, %v1364_v11  ;;  %v1417_v13 = vcombine.high %v1272_v61, %v1364_v11  ;;  %v2058_v14 = vpop.f32.mrb[9].mxu1  ;;  %v2160_v11 = vld [vmem:[%s2713_s11 + $0x8] sm:$0xff]  }
 0x65c   : > { %v1367_v15 = vpop.f32.mrb[10].mxu1 }
 0x65d   : > { %v1424_v18 = vrot.slane %v1416_v12, %v2442_v41  ;;  %v1431_v19 = vrot.slane %v1417_v13, %v2442_v41  ;;  %v2059_v20 = vpop.f32.mrb[11].mxu1 }
 0x65f   : > { %v1448_v21 = vcombine.low %v1424_v18, %v1440_v16  ;;  %v1449_v23 = vcombine.high %v1424_v18, %v1440_v16  ;;  %v1464_v24 = vcombine.low %v1431_v19, %v1447_v17  ;;  %v1465_v25 = vcombine.high %v1431_v19, %v1447_v17  ;;  %v1957_v16 = vld [vmem:[%s2709_s7] ss:$0 sm:$0xff] }
 0x660   : > { %v1958_v18 = vld [vmem:[%s2710_s8] ss:$0 sm:$0xff] }
 0x661   : > { %v1456_v30 = vrot.slane %v1448_v21, %v2444_v47  ;;  %v1463_v31 = vrot.slane %v1449_v23, %v2444_v47  ;;  %v1472_v32 = vrot.slane %v1464_v24, %v2444_v47  ;;  %v1479_v33 = vrot.slane %v1465_v25, %v2444_v47  ;;  %v2161_v23 = vld [vmem:[%s2713_s11 + $0x10] sm:$0xff]   ;;  %v2162_v24 = vld [vmem:[%s2713_s11 + $0x18] sm:$0xff]   ;;  %v2163_v25 = vld [vmem:[%s2713_s11 + $0x20] sm:$0xff]  }
 0x663   : > { %v1484_v34 = vcombine.low %v1456_v30, %v1463_v31  ;;  %v1951_v35 = vcombine.high %v1456_v30, %v1463_v31  ;;  %v1500_v36 = vcombine.low %v1472_v32, %v1479_v33  ;;  %v1952_v37 = vcombine.high %v1472_v32, %v1479_v33  ;;  %v2165_v30 = vld [vmem:[%s2713_s11 + $0x30] sm:$0xff]   ;;  %v2166_v31 = vld [vmem:[%s2713_s11 + $0x38] sm:$0xff]   ;;  %v1959_v32 = vld [vmem:[%s2712_s10] ss:$0 sm:$0xff] }
 0x665   : > { %v1491_v39 = vrot.slane %v1484_v34, %v2442_v41  ;;  %v1499_v40 = vrot.slane %v1951_v35, %v2442_v41  ;;  %v1507_v42 = vrot.slane %v1500_v36, %v2442_v41  ;;  %v1515_v43 = vrot.slane %v1952_v37, %v2442_v41 }
 0x667   : > { %v1517_v44 = vcombine.high %v1491_v39, %v1499_v40  ;;  %v1533_v46 = vcombine.high %v1507_v42, %v1515_v43  ;;  %v1516_v22 = vcombine.low %v1491_v39, %v1499_v40  ;;  %v1532_v27 = vcombine.low %v1507_v42, %v1515_v43 }
 0x669   : > { %v1531_v49 = vrot.slane %v1517_v44, %v2444_v47  ;;  %v1547_v50 = vrot.slane %v1533_v46, %v2444_v47  ;;  %v1524_v51 = vrot.slane %v1516_v22, %v2444_v47  ;;  %v1540_v52 = vrot.slane %v1532_v27, %v2444_v47  ;;  %v1963_v44 = vld [vmem:[%s2714_s12] ss:$0 sm:$0xff] }
 0x66b   : > { %v1550_v45 = vcombine.low %v1531_v49, %v1547_v50  ;;  %v1549_v48 = vcombine.high %v1524_v51, %v1540_v52  ;;  %v1551_v54 = vcombine.high %v1531_v49, %v1547_v50  ;;  %v1548_v29 = vcombine.low %v1524_v51, %v1540_v52 }
 0x66d   : > { %1557 = vrot.lane.b32.xlu1 %v1550_v45, %s2262_s20  ;;  %1553 = vrot.lane.b32.xlu0 %v1549_v48, %s2263_s21  ;;  %s1929_s20 = sshll.u32 %s429_s16, 3  ;;  %s2265_s21 = smov [#allocation2]  }
 0x66e   : > { %s431_s24 = scalar_lea.vmem [#allocation2], %s1929_s20 }
 0x66f   : > { %s1866_s30 = sshll.u32 %s431_s24, 4  ;;  %s2661_s30 = int_to_ptr.vmem [resolvable:$true] %s1866_s30 }
 0x670   : > { %s2189_s20 = scalar_lea.vmem %s2661_s30, 128 }
 0x671   : > { %1561 = vrot.lane.b32.xlu1 %v1551_v54, %s2264_s22  ;;  %p2190_p11 = scmp.ne.s32.totalorder %s2661_s30, %s2189_s20  ;;  %s2193_s22 = sshll.u32 %s2265_s21, 4  ;;  %s2194_s22 = int_to_ptr.vmem [resolvable:$false] %s2193_s22 }
 0x672   : > { %s2195_s2 = scalar_lea.vmem %s2194_s22, 256  ;;  %p2196_p0 = scmp.lt.s32.totalorder %s2661_s30, %s2194_s22 }
 0x673   : > { %p2191_p12 = pnand %p2190_p11, %p2374_p5  ;;  %p2197_p1 = scmp.lt.s32.totalorder %s2195_s2, %s2189_s20 }
 0x675   : > { %p2192_p13 = pneg %p2191_p12  ;;  %p2198_p2 = por %p2197_p1, %p2196_p0 }
 0x677   : > { %p2199_p3 = pnand %p2198_p2, %p2192_p13 }
 0x6df   : > { %v1558_v41 = vpop.permute.xlu1 %1557  ;;  %v1554_v28 = vpop.permute.xlu0 %1553 }
 0x6e0   : > { %v1564_v56 = vsel %vm998_vm2, %v1548_v29, %v1554_v28 }
 0x6e1   : > { %v1566_v58 = vsel %vm1565_vm4, %v1564_v56, %v1558_v41 }
 0x6e3   : > { %v1562_v57 = vpop.permute.xlu1 %1561 }
 0x6e4   : > { %v1568_v59 = vsel %vm1567_vm5, %v1566_v58, %v1562_v57 }
 0x6e5   : > { %v1569_v47 = vpack.c.bf16 %v1568_v59, %v1568_v59 }
 0x6e7   : > { %2071 = vmatmul.mubr.msk.bf16.vlgmr.msra.gmra.mrb[12].mxu1 %vm440_vm0, %v1569_v47 }
 0x6e8   : > { %2098 = vmatprep.mubr.msk.bf16.mxu1 %vm2254_vm1, %v2253_v8  ;;  %2083 = vmatpush3.bf16.msra.mxu1 %v2159_v55 }
 0x6e9   : > { %2084 = vmatprep.subr.bf16.mxu1 %v2253_v8 }
 0x6ec   : > { %2085 = vmatpush3.bf16.msra.mxu1 %v2160_v11 }
 0x6ed   : > { %2086 = vmatprep.subr.bf16.mxu1 %v2253_v8 }
 0x6f0   : > { %2087 = vmatpush3.bf16.msra.mxu1 %v2161_v23 }
 0x6f1   : > { %2088 = vmatprep.subr.bf16.mxu1 %v2253_v8 }
 0x6f4   : > { %2089 = vmatpush3.bf16.msra.mxu1 %v2162_v24 }
 0x6f5   : > { %2090 = vmatprep.subr.bf16.mxu1 %v2253_v8 }
 0x6f8   : > { %2091 = vmatpush3.bf16.msra.mxu1 %v2163_v25 }
 0x6f9   : > { %2092 = vmatprep.subr.bf16.mxu1 %v2253_v8 }
 0x6fc   : > { %2093 = vmatpush3.bf16.msra.mxu1 %v2164_v26 }
 0x6fd   : > { %2094 = vmatprep.subr.bf16.mxu1 %v2253_v8 }
 0x700   : > { %2095 = vmatpush3.bf16.msra.mxu1 %v2165_v30 }
 0x701   : > { %2096 = vmatprep.subr.bf16.mxu1 %v2253_v8 }
 0x704   : > { %2097 = vmatpush3.bf16.msra.mxu1 %v2166_v31 }
 0x7ba   : > { %v1630_v61 = vpop.f32.mrb[12].mxu1 }
 0x7bb   : > { %v1631_v62 = vadd.f32 %v1953_v60, %v1630_v61  ;;  %v2072_v63 = vpop.f32.mrb[13].mxu1 }
 0x7bc   : > { %v1633_v1 = vpop.f32.mrb[14].mxu1 }
 0x7bd   : > { %v2596_v53 = vadd.f32 %v1631_v62, %v2389_v0  ;;  %v2073_v2 = vpop.f32.mrb[15].mxu1  ;;  %v2158_v0 = vld [vmem:[%s2711_s9 + $0x8] sm:$0xff]  }
 0x7be   : > { %2077 = vmatpush3.bf16.msra.mxu0 %v2158_v0 }
 0x7bf   : > { %v1639_v3 = vsel %vm440_vm0, %v2596_v53, 0.0 }
 0x7c0   : > { %1640 = vadd.xlane.f32.xlu0 %v1639_v3 }
 0x84d   : > { %v1641_v4 = vpop.xlane.xlu0 %1640 }
 0x84e   : > { %v1642_v5 = vmul.f32 0.03125, %v1641_v4 }
 0x850   : > { %v1643_v6 = vsub.f32 %v2596_v53, %v1642_v5 }
 0x852   : > { %v1644_v7 = vmul.f32 %v1643_v6, %v1643_v6 }
 0x854   : > { %v1645_v9 = vsel %vm440_vm0, %v1644_v7, 0.0 }
 0x855   : > { %1646 = vadd.xlane.f32.xlu1 %v1645_v9 }
 0x8e2   : > { %v1647_v12 = vpop.xlane.xlu1 %1646 }
 0x8e3   : > { %v1648_v13 = vmul.f32 0.03125, %v1647_v12 }
 0x8e5   : > { %v1649_v14 = vadd.f32 1e-05, %v1648_v13 }
 0x8e7   : > { %2185 = vrsqrt.f32 %v1649_v14 }
 0x8f1   : > { %v2186_v15 = vpop.eup %2185 }
 0x8f2   : > { %v1651_v17 = vmul.f32 %v2186_v15, %v1643_v6 }
 0x8f4   : > { %v1658_v19 = vmul.f32 %v1957_v16, %v1651_v17 }
 0x8f6   : > { %v1665_v20 = vadd.f32 %v1958_v18, %v1658_v19 }
 0x8f8   : > { %v1666_v21 = vpack.c.bf16 %v1665_v20, %v1665_v20 }
 0x8fa   : > { %2079 = vmatmul.mubr.msk.bf16.vlgmr.msra.gmra.mrb[24].mxu0 %vm440_vm0, %v1666_v21 }
 0x9cd   : > { %v1727_v33 = vpop.f32.mrb[24].mxu0 }
 0x9ce   : > { %v1728_v34 = vadd.f32 %v1959_v32, %v1727_v33  ;;  %v2080_v35 = vpop.f32.mrb[25].mxu0 }
 0x9cf   : > { %v1730_v36 = vpop.f32.mrb[26].mxu0 }
 0x9d0   : > { %v1733_v37 = vmul.f32 0.851, %v1728_v34  ;;  %v2081_v38 = vpop.f32.mrb[27].mxu0 }
 0x9d2   : > { %2187 = vtanh.f32 %v1733_v37 }
 0x9dc   : > { %v2188_v39 = vpop.eup %2187 }
 0x9dd   : > { %v1735_v8 = vadd.f32 1.0, %v2188_v39 }
 0x9df   : > { %v1736_v40 = vmul.f32 0.5, %v1735_v8 }
 0x9e1   : > { %v1737_v42 = vmul.f32 %v1736_v40, %v1728_v34 }
 0x9e3   : > { %v1738_v43 = vpack.c.bf16 %v1737_v42, %v1737_v42 }
 0x9e5   : > { %2099 = vmatmul.mubr.bf16.vlgmr.msra.gmra.mrb[16].mxu1 %v1738_v43 }
 0xab8   : > { %v1844_v46 = vpop.f32.mrb[16].mxu1 }
 0xab9   : > { %v1845_v22 = vadd.f32 %v1963_v44, %v1844_v46  ;;  %v2100_v27 = vpop.f32.mrb[17].mxu1 }
 0xaba   : > { %v1847_v49 = vpop.f32.mrb[18].mxu1 }
 0xabb   : > { %v1850_v50 = vadd.f32 %v1845_v22, %v2596_v53  ;;  %v2101_v51 = vpop.f32.mrb[19].mxu1 }
 0xabd   : > { %1851 = vst.msk [vmem:[%s431_s24] sm:$0xff] %vm440_vm0, %v1850_v50 }
 0xabe   : > { %2202 = shalt.err (!%p2199_p3)
}
 0xabf   : > { %s2203_s0 = scalar_lea.hbm %s2659_s1, 128  ;;  %s2207_s24 = scalar_lea.hbm %s2715_s13, 256 }
 0xac0   : > { %p2204_p4 = scmp.ne.s32.totalorder %s2659_s1, %s2203_s0  ;;  %p2208_p9 = scmp.lt.u32.totalorder %s2659_s1, %s2715_s13 }
 0xac1   : > { %p2209_p10 = scmp.lt.u32.totalorder %s2207_s24, %s2203_s0  ;;  %p2211_p12 = scmp.lt.u32.totalorder %s2203_s0, %s2659_s1 }
 0xac2   : > { %p2205_p7 = pnand %p2204_p4, %p2374_p5 }
 0xac3   : > { %p2210_p11 = por %p2209_p10, %p2208_p9 }
 0xac4   : > { %p2206_p8 = pneg %p2205_p7 }
 0xac5   : > { %p2212_p13 = por %p2211_p12, %p2210_p11 }
 0xac7   : > { %p2213_p0 = pnand %p2212_p13, %p2206_p8 }
 0xac9   : > { %2216 = shalt.err (!%p2213_p0)
}
 0xaca   : > { %2102 = dma.vmem_to_hbm [thread:$0]  (%p2374_p5), %s2661_s30, 128, %s2659_s1, %s1853_s29  }
 0xacb PF: > { %p2108_p1 = scmp.ge.s32.totalorder %s2251_s28, 2  ;;  %s1878_s2 = sand.u32 1, %s2239_s25  }
 0xacc   : > { %s1879_s20 = scalar_lea.sflag [#allocation3], %s1878_s2 }
 0xacd   : > { %p2105_p2 = pnand %p2108_p1, %p2378_p6 }
 0xacf   : > { %2234 = dma.done.wait (!%p2105_p2), %s1879_s20, 128  }
 0xad0   : > { %2236 = vsyncadd (!%p2105_p2), %s1879_s20, 4294967168  ;;  %p23_p3 = scmp.ge.s32.totalorder %s2361_s14, 4   ;;  %s2724_s25 = smov %s2243_s26 }
 0xad1   : > { %s2725_s26 = smov %s2247_s27  ;;  %s2726_s27 = smov %s2372_s17 }
 0xad2   : > { %s2727_s28 = smov %s2361_s14  ;;  %25 = sbr.rel (!%p23_p3) target bundleno = 7 (0x7), region = 107 }
 0xad9   :  { %1884 = vsyncpa [#allocation3], 1 }
 0xada   :  { %1886 = vsyncpa [#allocation3 + $0x1], 1 }

// kernel: tpu_custom_call.1
= control target key start
LH: loop header
LB: loop body
LE: loop exit
PB: predicated region body
PF: predicated region fallthrough
CT: control target
= control target key end

     0   :  { %s2702_s0 = inlined_call_operand.vmem [shape: f32[2,8,32], index: 0, kind: input, shape index: {}]   ;;  %s2703_s1 = inlined_call_operand.vmem [shape: f32[1,32], index: 1, kind: input, shape index: {}]   ;;  %s2704_s2 = inlined_call_operand.vmem [shape: f32[1,32], index: 2, kind: input, shape index: {}]   ;;  %s2705_s3 = inlined_call_operand.vmem [shape: bf16[32,96], index: 3, kind: input, shape index: {}]   ;;  %s2706_s4 = inlined_call_operand.vmem [shape: f32[1,96], index: 4, kind: input, shape index: {}]   ;;  %s2707_s5 = inlined_call_operand.vmem [shape: bf16[32,32], index: 5, kind: input, shape index: {}]   ;;  %s2708_s6 = inlined_call_operand.vmem [shape: f32[1,32], index: 6, kind: input, shape index: {}]   ;;  %s2709_s7 = inlined_call_operand.vmem [shape: f32[1,32], index: 7, kind: input, shape index: {}]   ;;  %s2710_s8 = inlined_call_operand.vmem [shape: f32[1,32], index: 8, kind: input, shape index: {}]   ;;  %s2711_s9 = inlined_call_operand.vmem [shape: bf16[32,128], index: 9, kind: input, shape index: {}]   ;;  %s2712_s10 = inlined_call_operand.vmem [shape: f32[1,128], index: 10, kind: input, shape index: {}]   ;;  %s2713_s11 = inlined_call_operand.vmem [shape: bf16[128,32], index: 11, kind: input, shape index: {}]   ;;  %s2714_s12 = inlined_call_operand.vmem [shape: f32[1,32], index: 12, kind: input, shape index: {}]   ;;  %s2715_s13 = inlined_call_operand.hbm [shape: f32[2,8,32], index: 13, kind: output, shape index: {}]  }
   0x1   :  { %2716 = sst [smem:[#allocation5_spill]] %s2702_s0 }
   0x2   :  { %2717 = sst [smem:[#allocation6_spill]] %s2703_s1 }
   0x3   :  { %2718 = sst [smem:[#allocation7_spill]] %s2704_s2 }
   0x4   :  { %18 = vsyncpa [#allocation3], 0 }
   0x5   :  { %20 = vsyncpa [#allocation3 + $0x1], 0  ;;  %s2336_s25 = smov 0   ;;  %s2338_s26 = smov 0  }
   0x6   :  { %s2340_s27 = smov 0   ;;  %s2342_s28 = smov 0  }
   0x7 LB: > { %s2357_s29 = sadd.s32 4294967295, %s2251_s28   ;;  %s1925_s30 = sadd.s32 4294967294, %s2251_s28   ;;  %s2251_s28 = sphi %s2342_s28, %s2727_s28   ;;  %s2247_s27 = sphi %s2340_s27, %s2726_s27   ;;  %s2243_s26 = sphi %s2338_s26, %s2725_s26   ;;  %s2239_s25 = sphi %s2336_s25, %s2724_s25  }
   0x8   : > { %s2361_s14 = sadd.s32 1, %s2251_s28   ;;  %s311_s15 = sadd.s32 1, %s2247_s27 }
   0x9   : > { %s308_s16 = ssub.s32 %s2251_s28, %s2361_s14  ;;  %p321_p0 = scmp.ne.s32.totalorder %s2247_s27, %s2243_s26 }
   0xa   : > { %p309_p1 = scmp.eq.s32.totalorder %s308_s16, 0  ;;  %p322_p2 = scmp.eq.s32.totalorder %s2357_s29, 1 }
   0xb   : > { %p327_p3 = scmp.ne.s32.totalorder %s2243_s26, %s2239_s25  ;;  %p328_p4 = scmp.eq.s32.totalorder %s1925_s30, 1 }
   0xc   : > { %s2372_s17 = scalar_select %p309_p1, %s2247_s27, %s311_s15  }
   0xd   : > { %p2374_p5 = por %p322_p2, %p321_p0  ;;  %p2378_p6 = por %p328_p4, %p327_p3 }
   0xe   : > { %p1928_p7 = scmp.ge.s32.totalorder %s2251_s28, 1  ;;  %p389_p8 = scmp.lt.s32.totalorder %s2251_s28, 3 }
  0x10   : > { %p390_p9 = pnand %p1928_p7, %p389_p8 }
  0x11   : > { %p432_p10 = scmp.lt.s32.totalorder (!%p390_p9), %s2357_s29, 1  ;;  %vm440_vm0 = vcmask (!%p390_p9), 261120   ;;  %s2721_s0 = sld [smem:[#allocation5_spill]] (!%p390_p9)  ;;  %v2153_v7 = vld [vmem:[%s2705_s3] sm:$0xff] (!%p390_p9)   ;;  %v2253_v8 = vmov (!%p390_p9), 0.0   ;;  %vm2254_vm1 = vmmov (!%p390_p9), 0   ;;  %v552_v33 = vlaneseq (!%p390_p9) }
  0x12   : > { %393 = sbr.rel (%p390_p9) target bundleno = 2763 (0xacb), region = 72  ;;  %2010 = vmatprep.subr.bf16.mxu0 (!%p390_p9), %v2253_v8  ;;  %2014 = vmatprep.mubr.msk.bf16.mxu0 (!%p390_p9), %vm2254_vm1, %v2253_v8  ;;  %v2154_v9 = vld [vmem:[%s2705_s3 + $0x8] sm:$0xff] (!%p390_p9)   ;;  %s2722_s1 = sld [smem:[#allocation6_spill]] (!%p390_p9)  ;;  %v1933_v20 = vld [vmem:[%s2706_s4] ss:$0 sm:$0xff] (!%p390_p9)  ;;  %vm998_vm2 = vcmask (!%p390_p9), 64512  }
  0x13   : > { %2011 = vmatpush3.bf16.msra.mxu0 (!%p390_p9), %v2153_v7  ;;  %2030 = vmatprep.subr.bf16.mxu1 (!%p390_p9), %v2253_v8  ;;  %s2723_s2 = sld [smem:[#allocation7_spill]] (!%p390_p9)  ;;  %s2255_s16 = smov (!%p390_p9), 104   ;;  %v2259_v31 = vmov (!%p390_p9), 1983009808   ;;  %v2260_v35 = vmov (!%p390_p9), 1934713408  }
  0x14   : > { %2012 = vmatprep.subr.bf16.mxu0 (!%p390_p9), %v2253_v8  ;;  %2032 = vmatprep.mubr.msk.bf16.mxu1 (!%p390_p9), %vm2254_vm1, %v2253_v8  ;;  %s2258_s22 = smov (!%p390_p9), 96   ;;  %v550_v32 = vunpack.c.l.s4 (!%p390_p9), %v2259_v31  ;;  %v582_v36 = vunpack.c.l.s4 (!%p390_p9), %v2260_v35  ;;  %v553_v38 = vshrl.u32 (!%p390_p9), %v552_v33, 7  ;;  %s2261_s23 = smov (!%p390_p9), 64   ;;  %vm1234_vm3 = vcmask (!%p390_p9), 1043456  }
  0x15   : > { %vm1565_vm4 = vcmask (!%p390_p9), 130048   ;;  %vm1567_vm5 = vcmask (!%p390_p9), 195584  }
  0x16   : > { %v551_v37 = vunpack.c.0.s8 (!%p390_p9), %v550_v32  ;;  %v583_v40 = vunpack.c.0.s8 (!%p390_p9), %v582_v36 }
  0x17   : > { %2013 = vmatpush3.bf16.msra.mxu0 (!%p390_p9), %v2154_v9 }
  0x18   : > { %2018 = vmatprep.subr.bf16.mxu0 (!%p390_p9), %v2253_v8  ;;  %v1931_v14 = vld [vmem:[%s2722_s1] ss:$0 sm:$0xff] (!%p390_p9)  ;;  %v2442_v41 = vsub.s32 (!%p390_p9), %v551_v37, %v553_v38  ;;  %v2444_v47 = vsub.s32 (!%p390_p9), %v583_v40, %v553_v38 }
  0x19   : > { %s433_s20 = scalar_select %p432_p10, %s2357_s29, 1  ;;  %v1932_v16 = vld [vmem:[%s2723_s2] ss:$0 sm:$0xff] }
  0x1b   : > { %s1930_s21 = sshll.u32 %s433_s20, 3  ;;  %s2256_s20 = smov 120  }
  0x1c   : > { %s435_s24 = scalar_lea.vmem %s2721_s0, %s1930_s21  ;;  %s2257_s21 = smov 112  }
  0x1d   : > { %v2389_v0 = vld [vmem:[%s435_s24] sm:$0xff] }
  0x1e   : > { %v441_v1 = vsel %vm440_vm0, %v2389_v0, 0.0 }
  0x1f   : > { %442 = vadd.xlane.f32.xlu0 %v441_v1 }
  0xac   : > { %v443_v2 = vpop.xlane.xlu0 %442 }
  0xad   : > { %v445_v3 = vmul.f32 0.03125, %v443_v2 }
  0xaf   : > { %v446_v4 = vsub.f32 %v2389_v0, %v445_v3 }
  0xb1   : > { %v447_v5 = vmul.f32 %v446_v4, %v446_v4 }
  0xb3   : > { %v448_v6 = vsel %vm440_vm0, %v447_v5, 0.0 }
  0xb4   : > { %449 = vadd.xlane.f32.xlu0 %v448_v6 }
 0x141   : > { %v450_v10 = vpop.xlane.xlu0 %449 }
 0x142   : > { %v451_v11 = vmul.f32 0.03125, %v450_v10 }
 0x144   : > { %v452_v12 = vadd.f32 1e-05, %v451_v11 }
 0x146   : > { %2167 = vrsqrt.f32 %v452_v12 }
 0x150   : > { %v2168_v13 = vpop.eup %2167 }
 0x151   : > { %v454_v15 = vmul.f32 %v2168_v13, %v446_v4 }
 0x153   : > { %v461_v17 = vmul.f32 %v1931_v14, %v454_v15 }
 0x155   : > { %v468_v18 = vadd.f32 %v1932_v16, %v461_v17 }
 0x157   : > { %v469_v19 = vpack.c.bf16 %v468_v18, %v468_v18 }
 0x159   : > { %2015 = vmatmul.mubr.msk.bf16.vlgmr.msra.gmra.mrb[0].mxu0 %vm440_vm0, %v469_v19 }
 0x15a   : > { %2020 = vmatprep.mubr.msk.bf16.mxu0 %vm2254_vm1, %v2253_v8 }
 0x22c   : > { %v530_v21 = vpop.f32.mrb[0].mxu0 }
 0x22d   : > { %v2421_v22 = vadd.f32 %v1933_v20, %v530_v21  ;;  %v2016_v23 = vpop.f32.mrb[1].mxu0 }
 0x22e   : > { %v533_v24 = vpop.f32.mrb[2].mxu0 }
 0x22f   : > { %692 = vrot.lane.b32.xlu0 %v2421_v22, %s2255_s16  ;;  %688 = vrot.lane.b32.xlu1 %v2421_v22, %s2256_s20  ;;  %v2017_v25 = vpop.f32.mrb[3].mxu0  ;;  %v2426_v26 = vmul.f32 0.35355338, %v2421_v22 }
 0x233   : > { %690 = vrot.lane.b32.xlu1 %v2421_v22, %s2257_s21  ;;  %544 = vrot.lane.b32.xlu0 %v2426_v26, %s2255_s16  ;;  %s429_s16 = sand.u32 1, %s2243_s26  }
 0x237   : > { %694 = vrot.lane.b32.xlu1 %v2421_v22, %s2258_s22 }
 0x2a1   : > { %v2431_v27 = vpop.permute.xlu1 %688  ;;  %v2437_v29 = vpop.permute.xlu0 %692 }
 0x2a2   : > { %696 = vrot.lane.b32.xlu1 %v2431_v27, %s2258_s22 }
 0x2a5   : > { %v2434_v28 = vpop.permute.xlu1 %690  ;;  %v545_v57 = vpop.permute.xlu0 %544 }
 0x2a6   : > { %698 = vrot.lane.b32.xlu1 %v2434_v28, %s2258_s22 }
 0x2a9   : > { %v695_v30 = vpop.permute.xlu1 %694 }
 0x2aa   : > { %700 = vrot.lane.b32.xlu1 %v2437_v29, %s2258_s22  ;;  %s2264_s22 = smov 24  }
 0x2ae   : > { %538 = vrot.lane.b32.xlu1 %v2426_v26, %s2256_s20  ;;  %s2262_s20 = smov 16  }
 0x2b2   : > { %541 = vrot.lane.b32.xlu1 %v2426_v26, %s2257_s21  ;;  %s2263_s21 = smov 8  }
 0x314   : > { %v697_v34 = vpop.permute.xlu1 %696 }
 0x318   : > { %v699_v39 = vpop.permute.xlu1 %698 }
 0x319   : > { %v706_v42 = vcombine.low %v695_v30, %v699_v39  ;;  %v707_v43 = vcombine.high %v695_v30, %v699_v39 }
 0x31b   : > { %v714_v48 = vrot.slane %v706_v42, %v2442_v41  ;;  %v721_v49 = vrot.slane %v707_v43, %v2442_v41 }
 0x31c   : > { %v701_v44 = vpop.permute.xlu1 %700 }
 0x31d   : > { %v722_v45 = vcombine.low %v697_v34, %v701_v44  ;;  %v723_v46 = vcombine.high %v697_v34, %v701_v44 }
 0x31f   : > { %v730_v50 = vrot.slane %v722_v45, %v2442_v41  ;;  %v737_v51 = vrot.slane %v723_v46, %v2442_v41 }
 0x320   : > { %v539_v52 = vpop.permute.xlu1 %538 }
 0x321   : > { %v738_v53 = vcombine.low %v714_v48, %v730_v50  ;;  %v739_v54 = vcombine.high %v714_v48, %v730_v50  ;;  %v754_v55 = vcombine.low %v721_v49, %v737_v51  ;;  %v755_v56 = vcombine.high %v721_v49, %v737_v51 }
 0x322   : > { %v563_v62 = vcombine.low %v539_v52, %v545_v57  ;;  %v564_v63 = vcombine.high %v539_v52, %v545_v57 }
 0x323   : > { %v746_v58 = vrot.slane %v738_v53, %v2444_v47  ;;  %v753_v59 = vrot.slane %v739_v54, %v2444_v47  ;;  %v762_v60 = vrot.slane %v754_v55, %v2444_v47  ;;  %v769_v61 = vrot.slane %v755_v56, %v2444_v47 }
 0x324   : > { %v542_v1 = vpop.permute.xlu1 %541  ;;  %v571_v13 = vrot.slane %v563_v62, %v2442_v41  ;;  %v578_v14 = vrot.slane %v564_v63, %v2442_v41 }
 0x325   : > { %v774_v2 = vcombine.low %v746_v58, %v753_v59  ;;  %v1939_v3 = vcombine.high %v746_v58, %v753_v59  ;;  %v790_v4 = vcombine.low %v762_v60, %v769_v61  ;;  %v1940_v5 = vcombine.high %v762_v60, %v769_v61 }
 0x326   : > { %v547_v6 = vcombine.low %v2426_v26, %v542_v1  ;;  %v548_v7 = vcombine.high %v2426_v26, %v542_v1 }
 0x327   : > { %v781_v9 = vrot.slane %v774_v2, %v2442_v41  ;;  %v789_v10 = vrot.slane %v1939_v3, %v2442_v41  ;;  %v797_v11 = vrot.slane %v790_v4, %v2442_v41  ;;  %v805_v12 = vrot.slane %v1940_v5, %v2442_v41 }
 0x328   : > { %v555_v15 = vrot.slane %v547_v6, %v2442_v41  ;;  %v562_v16 = vrot.slane %v548_v7, %v2442_v41 }
 0x329   : > { %v806_v17 = vcombine.low %v781_v9, %v789_v10  ;;  %v822_v18 = vcombine.low %v797_v11, %v805_v12  ;;  %v807_v19 = vcombine.high %v781_v9, %v789_v10  ;;  %v823_v20 = vcombine.high %v797_v11, %v805_v12 }
 0x32a   : > { %v579_v21 = vcombine.low %v555_v15, %v571_v13  ;;  %v580_v23 = vcombine.high %v555_v15, %v571_v13  ;;  %v595_v24 = vcombine.low %v562_v16, %v578_v14  ;;  %v596_v25 = vcombine.high %v562_v16, %v578_v14 }
 0x32b   : > { %v814_v26 = vrot.slane %v806_v17, %v2444_v47  ;;  %v830_v30 = vrot.slane %v822_v18, %v2444_v47  ;;  %v821_v31 = vrot.slane %v807_v19, %v2444_v47  ;;  %v837_v32 = vrot.slane %v823_v20, %v2444_v47 }
 0x32c   : > { %v587_v33 = vrot.slane %v579_v21, %v2444_v47  ;;  %v594_v34 = vrot.slane %v580_v23, %v2444_v47  ;;  %v603_v35 = vrot.slane %v595_v24, %v2444_v47  ;;  %v610_v36 = vrot.slane %v596_v25, %v2444_v47 }
 0x32d   : > { %v838_v37 = vcombine.low %v814_v26, %v830_v30  ;;  %v840_v38 = vcombine.low %v821_v31, %v837_v32  ;;  %v839_v53 = vcombine.high %v814_v26, %v830_v30  ;;  %v841_v5 = vcombine.high %v821_v31, %v837_v32 }
 0x32e   : > { %v615_v39 = vcombine.low %v587_v33, %v594_v34  ;;  %v1937_v40 = vcombine.high %v587_v33, %v594_v34  ;;  %v631_v42 = vcombine.low %v603_v35, %v610_v36  ;;  %v1938_v43 = vcombine.high %v603_v35, %v610_v36 }
 0x32f   : > { %v842_v44 = vpack.c.bf16 %v838_v37, %v838_v37  ;;  %v844_v45 = vpack.c.bf16 %v840_v38, %v840_v38  ;;  %v843_v63 = vpack.c.bf16 %v839_v53, %v839_v53  ;;  %v845_v7 = vpack.c.bf16 %v841_v5, %v841_v5 }
 0x330   : > { %v622_v46 = vrot.slane %v615_v39, %v2442_v41  ;;  %v630_v48 = vrot.slane %v1937_v40, %v2442_v41  ;;  %v638_v49 = vrot.slane %v631_v42, %v2442_v41  ;;  %v646_v50 = vrot.slane %v1938_v43, %v2442_v41 }
 0x331   : > { %v1003_v51 = vsel %vm998_vm2, %v842_v44, 0  ;;  %v1095_v52 = vsel %vm998_vm2, %v844_v45, 0  ;;  %v1049_v4 = vsel %vm998_vm2, %v843_v63, 0  ;;  %v1141_v10 = vsel %vm998_vm2, %v845_v7, 0 }
 0x332   : > { %v647_v54 = vcombine.low %v622_v46, %v630_v48  ;;  %v663_v55 = vcombine.low %v638_v49, %v646_v50  ;;  %2019 = vmatpush3.bf16.xpose.msra.mxu0 %v1003_v51  ;;  %2031 = vmatpush3.bf16.xpose.msra.mxu1 %v1095_v52  ;;  %v648_v56 = vcombine.high %v622_v46, %v630_v48 }
 0x333   : > { %2024 = vmatprep.subr.bf16.mxu0 %v2253_v8  ;;  %v664_v57 = vcombine.high %v638_v49, %v646_v50  ;;  %2042 = vmatprep.subr.bf16.mxu1 %v2253_v8 }
 0x334   : > { %v655_v58 = vrot.slane %v647_v54, %v2444_v47  ;;  %v671_v59 = vrot.slane %v663_v55, %v2444_v47  ;;  %v662_v60 = vrot.slane %v648_v56, %v2444_v47 }
 0x335   : > { %v678_v61 = vrot.slane %v664_v57, %v2444_v47 }
 0x336   : > { %v679_v62 = vcombine.low %v655_v58, %v671_v59  ;;  %v680_v6 = vcombine.high %v655_v58, %v671_v59 }
 0x337   : > { %v681_v1 = vcombine.low %v662_v60, %v678_v61  ;;  %v682_v11 = vcombine.high %v662_v60, %v678_v61 }
 0x338   : > { %v683_v2 = vpack.c.bf16 %v679_v62, %v679_v62  ;;  %v684_v9 = vpack.c.bf16 %v680_v6, %v680_v6 }
 0x339   : > { %v685_v3 = vpack.c.bf16 %v681_v1, %v681_v1  ;;  %v686_v12 = vpack.c.bf16 %v682_v11, %v682_v11 }
 0x33a   : > { %2021 = vmatmul.mubr.msk.bf16.vlgmr.msra.gmra.mrb[4].mxu0 %vm998_vm2, %v683_v2 }
 0x33b   : > { %2033 = vmatmul.mubr.msk.bf16.vlgmr.msra.gmra.mrb[0].mxu1 %vm998_vm2, %v685_v3  ;;  %2025 = vmatpush3.bf16.xpose.msra.mxu0 %v1049_v4 }
 0x33c   : > { %2026 = vmatprep.mubr.msk.bf16.mxu0 %vm2254_vm1, %v2253_v8  ;;  %2036 = vmatprep.subr.bf16.mxu0 %v2253_v8 }
 0x33d   : > { %2044 = vmatprep.mubr.msk.bf16.mxu1 %vm2254_vm1, %v2253_v8 }
 0x342   : > { %2027 = vmatmul.mubr.msk.bf16.vlgmr.msra.gmra.mrb[8].mxu0 %vm998_vm2, %v684_v9 }
 0x343   : > { %2037 = vmatpush3.bf16.xpose.msra.mxu0 %v1141_v10  ;;  %2038 = vmatprep.mubr.msk.bf16.mxu0 %vm2254_vm1, %v2253_v8 }
 0x344   : > { %2048 = vmatprep.subr.bf16.mxu0 %v2253_v8 }
 0x34a   : > { %2039 = vmatmul.mubr.msk.bf16.vlgmr.msra.gmra.mrb[12].mxu0 %vm998_vm2, %v686_v12 }
 0x34b   : > { %2050 = vmatprep.mubr.msk.bf16.mxu0 %vm2254_vm1, %v2253_v8 }
 0x40d   : > { %v1039_v13 = vpop.f32.mrb[4].mxu0 }
 0x40e   : > { %v1131_v14 = vpop.f32.mrb[0].mxu1  ;;  %v2022_v15 = vpop.f32.mrb[5].mxu0  ;;  %v1183_v16 = vsel %vm998_vm2, %v1039_v13, -inf }
 0x40f   : > { %v2034_v17 = vpop.f32.mrb[1].mxu1  ;;  %v1189_v18 = vsel %vm998_vm2, %v1131_v14, -inf  ;;  %1184 = vmax.xlane.f32.xlu1 %v1183_v16  ;;  %v1042_v19 = vpop.f32.mrb[6].mxu0 }
 0x410   : > { %1190 = vmax.xlane.f32.xlu0 %v1189_v18  ;;  %v1134_v20 = vpop.f32.mrb[2].mxu1  ;;  %v2023_v21 = vpop.f32.mrb[7].mxu0 }
 0x411   : > { %v2035_v23 = vpop.f32.mrb[3].mxu1 }
 0x415   : > { %v1085_v24 = vpop.f32.mrb[8].mxu0 }
 0x416   : > { %v2028_v25 = vpop.f32.mrb[9].mxu0  ;;  %v1186_v26 = vsel %vm998_vm2, %v1085_v24, -inf }
 0x417   : > { %1187 = vmax.xlane.f32.xlu0 %v1186_v26  ;;  %v1088_v30 = vpop.f32.mrb[10].mxu0 }
 0x418   : > { %v2029_v31 = vpop.f32.mrb[11].mxu0 }
 0x41d   : > { %v1177_v32 = vpop.f32.mrb[12].mxu0 }
 0x41e   : > { %v2040_v33 = vpop.f32.mrb[13].mxu0  ;;  %v1192_v34 = vsel %vm998_vm2, %v1177_v32, -inf }
 0x41f   : > { %1193 = vmax.xlane.f32.xlu1 %v1192_v34  ;;  %v1180_v35 = vpop.f32.mrb[14].mxu0 }
 0x420   : > { %v2041_v36 = vpop.f32.mrb[15].mxu0 }
 0x42d   : > { %846 = vrot.lane.b32.xlu0 %v2421_v22, %s2261_s23 }
 0x430   : > { %848 = vrot.lane.b32.xlu1 %v2431_v27, %s2261_s23 }
 0x49c   : > { %v1185_v37 = vpop.xlane.xlu1 %1184 }
 0x49d   : > { %v1195_v38 = vsub.f32 %v1039_v13, %v1185_v37  ;;  %v1191_v40 = vpop.xlane.xlu0 %1190 }
 0x49e   : > { %v1197_v51 = vsub.f32 %v1131_v14, %v1191_v40 }
 0x49f   : > { %v1199_v39 = vmul.f32 1.442695, %v1195_v38 }
 0x4a0   : > { %v1203_v52 = vmul.f32 1.442695, %v1197_v51 }
 0x4a1   : > { %2169 = vpow2.f32 %v1199_v39 }
 0x4a4   : > { %v1188_v42 = vpop.xlane.xlu0 %1187 }
 0x4a5   : > { %v1196_v43 = vsub.f32 %v1085_v24, %v1188_v42 }
 0x4a7   : > { %v1201_v44 = vmul.f32 1.442695, %v1196_v43 }
 0x4a9   : > { %2171 = vpow2.f32 %v1201_v44 }
 0x4ab   : > { %v2506_v45 = vpop.eup %2169 }
 0x4ac   : > { %v1207_v46 = vsel %vm998_vm2, %v2506_v45, 0.0  ;;  %v1194_v27 = vpop.xlane.xlu1 %1193 }
 0x4ad   : > { %1208 = vadd.xlane.f32.xlu0 %v1207_v46  ;;  %v1198_v49 = vsub.f32 %v1177_v32, %v1194_v27 }
 0x4af   : > { %v1205_v50 = vmul.f32 1.442695, %v1198_v49 }
 0x4b0   : > { %v849_v57 = vpop.permute.xlu1 %848 }
 0x4b1   : > { %2173 = vpow2.f32 %v1205_v50 }
 0x4b2   : > { %2175 = vpow2.f32 %v1203_v52 }
 0x4b3   : > { %v2510_v48 = vpop.eup %2171 }
 0x4b4   : > { %v1210_v22 = vsel %vm998_vm2, %v2510_v48, 0.0 }
 0x4b5   : > { %1211 = vadd.xlane.f32.xlu1 %v1210_v22 }
 0x4bb   : > { %v2516_v53 = vpop.eup %2173 }
 0x4bc   : > { %v1216_v54 = vsel %vm998_vm2, %v2516_v53, 0.0  ;;  %v2520_v55 = vpop.eup %2175 }
 0x4c3   : > { %852 = vrot.lane.b32.xlu0 %v2437_v29, %s2261_s23  ;;  %v1213_v29 = vsel %vm998_vm2, %v2520_v55, 0.0 }
 0x4c6   : > { %850 = vrot.lane.b32.xlu1 %v2434_v28, %s2261_s23  ;;  %v847_v28 = vpop.permute.xlu0 %846  ;;  %s1973_s23 = sshll.u32 %s2357_s29, 7  ;;  %s1853_s29 = scalar_lea.sflag [#allocation3], %s429_s16 }
 0x4c7   : > { %s2659_s1 = scalar_lea.hbm %s2715_s13, %s1973_s23 }
 0x4e2   : > { %1217 = vadd.xlane.f32.xlu0 %v1216_v54 }
 0x4ea   : > { %1214 = vadd.xlane.f32.xlu1 %v1213_v29 }
 0x53a   : > { %v1209_v56 = vpop.xlane.xlu0 %1208 }
 0x53b   : > { %2177 = vrcp.f32 %v1209_v56 }
 0x53e   : > { %v853_v58 = vpop.permute.xlu0 %852 }
 0x53f   : > { %v874_v60 = vcombine.low %v849_v57, %v853_v58  ;;  %v875_v61 = vcombine.high %v849_v57, %v853_v58 }
 0x541   : > { %v882_v2 = vrot.slane %v874_v60, %v2442_v41  ;;  %v889_v3 = vrot.slane %v875_v61, %v2442_v41 }
 0x542   : > { %v1212_v59 = vpop.xlane.xlu1 %1211 }
 0x543   : > { %2179 = vrcp.f32 %v1212_v59 }
 0x545   : > { %v2178_v31 = vpop.eup %2177 }
 0x546   : > { %v851_v62 = vpop.permute.xlu1 %850  ;;  %v1220_v42 = vmul.f32 %v2178_v31, %v2506_v45 }
 0x547   : > { %v858_v63 = vcombine.low %v847_v28, %v851_v62  ;;  %v859_v1 = vcombine.high %v847_v28, %v851_v62 }
 0x548   : > { %v1227_v51 = vpack.c.bf16 %v1220_v42, %v1220_v42 }
 0x549   : > { %v866_v4 = vrot.slane %v858_v63, %v2442_v41  ;;  %v873_v5 = vrot.slane %v859_v1, %v2442_v41 }
 0x54b   : > { %v890_v6 = vcombine.low %v866_v4, %v882_v2  ;;  %v891_v7 = vcombine.high %v866_v4, %v882_v2  ;;  %v906_v9 = vcombine.low %v873_v5, %v889_v3  ;;  %v907_v10 = vcombine.high %v873_v5, %v889_v3 }
 0x54d   : > { %v898_v11 = vrot.slane %v890_v6, %v2444_v47  ;;  %v905_v12 = vrot.slane %v891_v7, %v2444_v47  ;;  %v914_v13 = vrot.slane %v906_v9, %v2444_v47  ;;  %v921_v14 = vrot.slane %v907_v10, %v2444_v47  ;;  %v2180_v36 = vpop.eup %2179 }
 0x54e   : > { %v1222_v43 = vmul.f32 %v2180_v36, %v2510_v48 }
 0x54f   : > { %v926_v15 = vcombine.low %v898_v11, %v905_v12  ;;  %v1941_v16 = vcombine.high %v898_v11, %v905_v12  ;;  %v942_v17 = vcombine.low %v914_v13, %v921_v14  ;;  %v1942_v18 = vcombine.high %v914_v13, %v921_v14 }
 0x550   : > { %v1228_v52 = vpack.c.bf16 %v1222_v43, %v1222_v43 }
 0x551   : > { %v933_v19 = vrot.slane %v926_v15, %v2442_v41  ;;  %v941_v20 = vrot.slane %v1941_v16, %v2442_v41  ;;  %v949_v21 = vrot.slane %v942_v17, %v2442_v41  ;;  %v957_v23 = vrot.slane %v1942_v18, %v2442_v41 }
 0x553   : > { %v958_v24 = vcombine.low %v933_v19, %v941_v20  ;;  %v974_v25 = vcombine.low %v949_v21, %v957_v23  ;;  %v959_v26 = vcombine.high %v933_v19, %v941_v20  ;;  %v975_v30 = vcombine.high %v949_v21, %v957_v23 }
 0x555   : > { %v966_v32 = vrot.slane %v958_v24, %v2444_v47  ;;  %v982_v33 = vrot.slane %v974_v25, %v2444_v47  ;;  %v973_v34 = vrot.slane %v959_v26, %v2444_v47  ;;  %v989_v35 = vrot.slane %v975_v30, %v2444_v47  ;;  %v2155_v26 = vld [vmem:[%s2707_s5] sm:$0xff]  }
 0x557   : > { %v990_v37 = vcombine.low %v966_v32, %v982_v33  ;;  %v991_v38 = vcombine.high %v966_v32, %v982_v33  ;;  %v992_v39 = vcombine.low %v973_v34, %v989_v35  ;;  %v993_v40 = vcombine.high %v973_v34, %v989_v35 }
 0x559   : > { %v994_v44 = vpack.c.bf16 %v990_v37, %v990_v37  ;;  %v995_v46 = vpack.c.bf16 %v991_v38, %v991_v38  ;;  %v996_v49 = vpack.c.bf16 %v992_v39, %v992_v39  ;;  %v997_v50 = vpack.c.bf16 %v993_v40, %v993_v40  ;;  %v2156_v38 = vld [vmem:[%s2707_s5 + $0x8] sm:$0xff]  }
 0x55b   : > { %v1236_v22 = vsel %vm1234_vm3, %v994_v44, 0  ;;  %v1282_v27 = vsel %vm1234_vm3, %v995_v46, 0  ;;  %v1328_v45 = vsel %vm1234_vm3, %v996_v49, 0  ;;  %v1374_v48 = vsel %vm1234_vm3, %v997_v50, 0 }
 0x55c   : > { %2043 = vmatpush3.bf16.msra.mxu1 %v1236_v22  ;;  %2049 = vmatpush3.bf16.msra.mxu0 %v1282_v27 }
 0x55d   : > { %2054 = vmatprep.subr.bf16.mxu1 %v2253_v8  ;;  %2060 = vmatprep.subr.bf16.mxu0 %v2253_v8 }
 0x55f   : > { %2045 = vmatmul.mubr.msk.bf16.vlgmr.msra.gmra.mrb[4].mxu1 %vm998_vm2, %v1227_v51  ;;  %2051 = vmatmul.mubr.msk.bf16.vlgmr.msra.gmra.mrb[16].mxu0 %vm998_vm2, %v1228_v52 }
 0x560   : > { %2055 = vmatpush3.bf16.msra.mxu1 %v1328_v45  ;;  %2061 = vmatpush3.bf16.msra.mxu0 %v1374_v48 }
 0x561   : > { %2062 = vmatprep.mubr.msk.bf16.mxu0 %vm2254_vm1, %v2253_v8  ;;  %2056 = vmatprep.mubr.msk.bf16.mxu1 %vm2254_vm1, %v2253_v8 }
 0x562   : > { %2066 = vmatprep.subr.bf16.mxu1 %v2253_v8  ;;  %2074 = vmatprep.subr.bf16.mxu0 %v2253_v8 }
 0x56f   : > { %v1218_v54 = vpop.xlane.xlu0 %1217 }
 0x570   : > { %2181 = vrcp.f32 %v1218_v54 }
 0x577   : > { %v1215_v29 = vpop.xlane.xlu1 %1214 }
 0x578   : > { %2183 = vrcp.f32 %v1215_v29 }
 0x57a   : > { %v2182_v28 = vpop.eup %2181 }
 0x57b   : > { %v1226_v56 = vmul.f32 %v2182_v28, %v2516_v53 }
 0x57d   : > { %v1230_v57 = vpack.c.bf16 %v1226_v56, %v1226_v56 }
 0x57f   : > { %2063 = vmatmul.mubr.msk.bf16.vlgmr.msra.gmra.mrb[20].mxu0 %vm998_vm2, %v1230_v57 }
 0x580   : > { %2078 = vmatprep.mubr.msk.bf16.mxu0 %vm2254_vm1, %v2253_v8 }
 0x582   : > { %v2184_v58 = vpop.eup %2183 }
 0x583   : > { %v1224_v59 = vmul.f32 %v2184_v58, %v2520_v55 }
 0x585   : > { %v1229_v60 = vpack.c.bf16 %v1224_v59, %v1224_v59 }
 0x587   : > { %2057 = vmatmul.mubr.msk.bf16.vlgmr.msra.gmra.mrb[8].mxu1 %vm998_vm2, %v1229_v60  ;;  %v1953_v60 = vld [vmem:[%s2708_s6] ss:$0 sm:$0xff] }
 0x588   : > { %2070 = vmatprep.mubr.msk.bf16.mxu1 %vm2254_vm1, %v2253_v8  ;;  %2067 = vmatpush3.bf16.msra.mxu1 %v2155_v26  ;;  %v2164_v26 = vld [vmem:[%s2713_s11 + $0x28] sm:$0xff]  }
 0x589   : > { %2068 = vmatprep.subr.bf16.mxu1 %v2253_v8 }
 0x58c   : > { %2069 = vmatpush3.bf16.msra.mxu1 %v2156_v38 }
 0x58d   : > { %2082 = vmatprep.subr.bf16.mxu1 %v2253_v8 }
 0x632   : > { %v1272_v61 = vpop.f32.mrb[4].mxu1  ;;  %v1318_v62 = vpop.f32.mrb[16].mxu0 }
 0x633   : > { %v2046_v63 = vpop.f32.mrb[5].mxu1  ;;  %v2052_v1 = vpop.f32.mrb[17].mxu0 }
 0x634   : > { %v1275_v53 = vpop.f32.mrb[6].mxu1  ;;  %v1321_v2 = vpop.f32.mrb[18].mxu0 }
 0x635   : > { %v2047_v3 = vpop.f32.mrb[7].mxu1  ;;  %v2053_v4 = vpop.f32.mrb[19].mxu0 }
 0x652   : > { %v1410_v5 = vpop.f32.mrb[20].mxu0 }
 0x653   : > { %v1432_v6 = vcombine.low %v1318_v62, %v1410_v5  ;;  %v1433_v7 = vcombine.high %v1318_v62, %v1410_v5  ;;  %v2064_v9 = vpop.f32.mrb[21].mxu0 }
 0x654   : > { %v1413_v10 = vpop.f32.mrb[22].mxu0 }
 0x655   : > { %v2065_v55 = vpop.f32.mrb[23].mxu0  ;;  %v1440_v16 = vrot.slane %v1432_v6, %v2442_v41  ;;  %v1447_v17 = vrot.slane %v1433_v7, %v2442_v41  ;;  %v2157_v10 = vld [vmem:[%s2711_s9] sm:$0xff]  }
 0x656   : > { %2075 = vmatpush3.bf16.msra.mxu0 %v2157_v10  ;;  %v2159_v55 = vld [vmem:[%s2713_s11] sm:$0xff]  }
 0x657   : > { %2076 = vmatprep.subr.bf16.mxu0 %v2253_v8 }
 0x65a   : > { %v1364_v11 = vpop.f32.mrb[8].mxu1 }
 0x65b   : > { %v1416_v12 = vcombine.low %v1272_v61, %v1364_v11  ;;  %v1417_v13 = vcombine.high %v1272_v61, %v1364_v11  ;;  %v2058_v14 = vpop.f32.mrb[9].mxu1  ;;  %v2160_v11 = vld [vmem:[%s2713_s11 + $0x8] sm:$0xff]  }
 0x65c   : > { %v1367_v15 = vpop.f32.mrb[10].mxu1 }
 0x65d   : > { %v1424_v18 = vrot.slane %v1416_v12, %v2442_v41  ;;  %v1431_v19 = vrot.slane %v1417_v13, %v2442_v41  ;;  %v2059_v20 = vpop.f32.mrb[11].mxu1 }
 0x65f   : > { %v1448_v21 = vcombine.low %v1424_v18, %v1440_v16  ;;  %v1449_v23 = vcombine.high %v1424_v18, %v1440_v16  ;;  %v1464_v24 = vcombine.low %v1431_v19, %v1447_v17  ;;  %v1465_v25 = vcombine.high %v1431_v19, %v1447_v17  ;;  %v1957_v16 = vld [vmem:[%s2709_s7] ss:$0 sm:$0xff] }
 0x660   : > { %v1958_v18 = vld [vmem:[%s2710_s8] ss:$0 sm:$0xff] }
 0x661   : > { %v1456_v30 = vrot.slane %v1448_v21, %v2444_v47  ;;  %v1463_v31 = vrot.slane %v1449_v23, %v2444_v47  ;;  %v1472_v32 = vrot.slane %v1464_v24, %v2444_v47  ;;  %v1479_v33 = vrot.slane %v1465_v25, %v2444_v47  ;;  %v2161_v23 = vld [vmem:[%s2713_s11 + $0x10] sm:$0xff]   ;;  %v2162_v24 = vld [vmem:[%s2713_s11 + $0x18] sm:$0xff]   ;;  %v2163_v25 = vld [vmem:[%s2713_s11 + $0x20] sm:$0xff]  }
 0x663   : > { %v1484_v34 = vcombine.low %v1456_v30, %v1463_v31  ;;  %v1951_v35 = vcombine.high %v1456_v30, %v1463_v31  ;;  %v1500_v36 = vcombine.low %v1472_v32, %v1479_v33  ;;  %v1952_v37 = vcombine.high %v1472_v32, %v1479_v33  ;;  %v2165_v30 = vld [vmem:[%s2713_s11 + $0x30] sm:$0xff]   ;;  %v2166_v31 = vld [vmem:[%s2713_s11 + $0x38] sm:$0xff]   ;;  %v1959_v32 = vld [vmem:[%s2712_s10] ss:$0 sm:$0xff] }
 0x665   : > { %v1491_v39 = vrot.slane %v1484_v34, %v2442_v41  ;;  %v1499_v40 = vrot.slane %v1951_v35, %v2442_v41  ;;  %v1507_v42 = vrot.slane %v1500_v36, %v2442_v41  ;;  %v1515_v43 = vrot.slane %v1952_v37, %v2442_v41 }
 0x667   : > { %v1517_v44 = vcombine.high %v1491_v39, %v1499_v40  ;;  %v1533_v46 = vcombine.high %v1507_v42, %v1515_v43  ;;  %v1516_v22 = vcombine.low %v1491_v39, %v1499_v40  ;;  %v1532_v27 = vcombine.low %v1507_v42, %v1515_v43 }
 0x669   : > { %v1531_v49 = vrot.slane %v1517_v44, %v2444_v47  ;;  %v1547_v50 = vrot.slane %v1533_v46, %v2444_v47  ;;  %v1524_v51 = vrot.slane %v1516_v22, %v2444_v47  ;;  %v1540_v52 = vrot.slane %v1532_v27, %v2444_v47  ;;  %v1963_v44 = vld [vmem:[%s2714_s12] ss:$0 sm:$0xff] }
 0x66b   : > { %v1550_v45 = vcombine.low %v1531_v49, %v1547_v50  ;;  %v1549_v48 = vcombine.high %v1524_v51, %v1540_v52  ;;  %v1551_v54 = vcombine.high %v1531_v49, %v1547_v50  ;;  %v1548_v29 = vcombine.low %v1524_v51, %v1540_v52 }
 0x66d   : > { %1557 = vrot.lane.b32.xlu1 %v1550_v45, %s2262_s20  ;;  %1553 = vrot.lane.b32.xlu0 %v1549_v48, %s2263_s21  ;;  %s1929_s20 = sshll.u32 %s429_s16, 3  ;;  %s2265_s21 = smov [#allocation2]  }
 0x66e   : > { %s431_s24 = scalar_lea.vmem [#allocation2], %s1929_s20 }
 0x66f   : > { %s1866_s30 = sshll.u32 %s431_s24, 4  ;;  %s2661_s30 = int_to_ptr.vmem [resolvable:$true] %s1866_s30 }
 0x670   : > { %s2189_s20 = scalar_lea.vmem %s2661_s30, 128 }
 0x671   : > { %1561 = vrot.lane.b32.xlu1 %v1551_v54, %s2264_s22  ;;  %p2190_p11 = scmp.ne.s32.totalorder %s2661_s30, %s2189_s20  ;;  %s2193_s22 = sshll.u32 %s2265_s21, 4  ;;  %s2194_s22 = int_to_ptr.vmem [resolvable:$false] %s2193_s22 }
 0x672   : > { %s2195_s2 = scalar_lea.vmem %s2194_s22, 256  ;;  %p2196_p0 = scmp.lt.s32.totalorder %s2661_s30, %s2194_s22 }
 0x673   : > { %p2191_p12 = pnand %p2190_p11, %p2374_p5  ;;  %p2197_p1 = scmp.lt.s32.totalorder %s2195_s2, %s2189_s20 }
 0x675   : > { %p2192_p13 = pneg %p2191_p12  ;;  %p2198_p2 = por %p2197_p1, %p2196_p0 }
 0x677   : > { %p2199_p3 = pnand %p2198_p2, %p2192_p13 }
 0x6df   : > { %v1558_v41 = vpop.permute.xlu1 %1557  ;;  %v1554_v28 = vpop.permute.xlu0 %1553 }
 0x6e0   : > { %v1564_v56 = vsel %vm998_vm2, %v1548_v29, %v1554_v28 }
 0x6e1   : > { %v1566_v58 = vsel %vm1565_vm4, %v1564_v56, %v1558_v41 }
 0x6e3   : > { %v1562_v57 = vpop.permute.xlu1 %1561 }
 0x6e4   : > { %v1568_v59 = vsel %vm1567_vm5, %v1566_v58, %v1562_v57 }
 0x6e5   : > { %v1569_v47 = vpack.c.bf16 %v1568_v59, %v1568_v59 }
 0x6e7   : > { %2071 = vmatmul.mubr.msk.bf16.vlgmr.msra.gmra.mrb[12].mxu1 %vm440_vm0, %v1569_v47 }
 0x6e8   : > { %2098 = vmatprep.mubr.msk.bf16.mxu1 %vm2254_vm1, %v2253_v8  ;;  %2083 = vmatpush3.bf16.msra.mxu1 %v2159_v55 }
 0x6e9   : > { %2084 = vmatprep.subr.bf16.mxu1 %v2253_v8 }
 0x6ec   : > { %2085 = vmatpush3.bf16.msra.mxu1 %v2160_v11 }
 0x6ed   : > { %2086 = vmatprep.subr.bf16.mxu1 %v2253_v8 }
 0x6f0   : > { %2087 = vmatpush3.bf16.msra.mxu1 %v2161_v23 }
 0x6f1   : > { %2088 = vmatprep.subr.bf16.mxu1 %v2253_v8 }
 0x6f4   : > { %2089 = vmatpush3.bf16.msra.mxu1 %v2162_v24 }
 0x6f5   : > { %2090 = vmatprep.subr.bf16.mxu1 %v2253_v8 }
 0x6f8   : > { %2091 = vmatpush3.bf16.msra.mxu1 %v2163_v25 }
 0x6f9   : > { %2092 = vmatprep.subr.bf16.mxu1 %v2253_v8 }
 0x6fc   : > { %2093 = vmatpush3.bf16.msra.mxu1 %v2164_v26 }
 0x6fd   : > { %2094 = vmatprep.subr.bf16.mxu1 %v2253_v8 }
 0x700   : > { %2095 = vmatpush3.bf16.msra.mxu1 %v2165_v30 }
 0x701   : > { %2096 = vmatprep.subr.bf16.mxu1 %v2253_v8 }
 0x704   : > { %2097 = vmatpush3.bf16.msra.mxu1 %v2166_v31 }
 0x7ba   : > { %v1630_v61 = vpop.f32.mrb[12].mxu1 }
 0x7bb   : > { %v1631_v62 = vadd.f32 %v1953_v60, %v1630_v61  ;;  %v2072_v63 = vpop.f32.mrb[13].mxu1 }
 0x7bc   : > { %v1633_v1 = vpop.f32.mrb[14].mxu1 }
 0x7bd   : > { %v2596_v53 = vadd.f32 %v1631_v62, %v2389_v0  ;;  %v2073_v2 = vpop.f32.mrb[15].mxu1  ;;  %v2158_v0 = vld [vmem:[%s2711_s9 + $0x8] sm:$0xff]  }
 0x7be   : > { %2077 = vmatpush3.bf16.msra.mxu0 %v2158_v0 }
 0x7bf   : > { %v1639_v3 = vsel %vm440_vm0, %v2596_v53, 0.0 }
 0x7c0   : > { %1640 = vadd.xlane.f32.xlu0 %v1639_v3 }
 0x84d   : > { %v1641_v4 = vpop.xlane.xlu0 %1640 }
 0x84e   : > { %v1642_v5 = vmul.f32 0.03125, %v1641_v4 }
 0x850   : > { %v1643_v6 = vsub.f32 %v2596_v53, %v1642_v5 }
 0x852   : > { %v1644_v7 = vmul.f32 %v1643_v6, %v1643_v6 }
 0x854   : > { %v1645_v9 = vsel %vm440_vm0, %v1644_v7, 0.0 }
 0x855   : > { %1646 = vadd.xlane.f32.xlu1 %v1645_v9 }
 0x8e2   : > { %v1647_v12 = vpop.xlane.xlu1 %1646 }
 0x8e3   : > { %v1648_v13 = vmul.f32 0.03125, %v1647_v12 }
 0x8e5   : > { %v1649_v14 = vadd.f32 1e-05, %v1648_v13 }
 0x8e7   : > { %2185 = vrsqrt.f32 %v1649_v14 }
 0x8f1   : > { %v2186_v15 = vpop.eup %2185 }
 0x8f2   : > { %v1651_v17 = vmul.f32 %v2186_v15, %v1643_v6 }
 0x8f4   : > { %v1658_v19 = vmul.f32 %v1957_v16, %v1651_v17 }
 0x8f6   : > { %v1665_v20 = vadd.f32 %v1958_v18, %v1658_v19 }
 0x8f8   : > { %v1666_v21 = vpack.c.bf16 %v1665_v20, %v1665_v20 }
 0x8fa   : > { %2079 = vmatmul.mubr.msk.bf16.vlgmr.msra.gmra.mrb[24].mxu0 %vm440_vm0, %v1666_v21 }
 0x9cd   : > { %v1727_v33 = vpop.f32.mrb[24].mxu0 }
 0x9ce   : > { %v1728_v34 = vadd.f32 %v1959_v32, %v1727_v33  ;;  %v2080_v35 = vpop.f32.mrb[25].mxu0 }
 0x9cf   : > { %v1730_v36 = vpop.f32.mrb[26].mxu0 }
 0x9d0   : > { %v1733_v37 = vmul.f32 0.851, %v1728_v34  ;;  %v2081_v38 = vpop.f32.mrb[27].mxu0 }
 0x9d2   : > { %2187 = vtanh.f32 %v1733_v37 }
 0x9dc   : > { %v2188_v39 = vpop.eup %2187 }
 0x9dd   : > { %v1735_v8 = vadd.f32 1.0, %v2188_v39 }
 0x9df   : > { %v1736_v40 = vmul.f32 0.5, %v1735_v8 }
 0x9e1   : > { %v1737_v42 = vmul.f32 %v1736_v40, %v1728_v34 }
 0x9e3   : > { %v1738_v43 = vpack.c.bf16 %v1737_v42, %v1737_v42 }
 0x9e5   : > { %2099 = vmatmul.mubr.bf16.vlgmr.msra.gmra.mrb[16].mxu1 %v1738_v43 }
 0xab8   : > { %v1844_v46 = vpop.f32.mrb[16].mxu1 }
 0xab9   : > { %v1845_v22 = vadd.f32 %v1963_v44, %v1844_v46  ;;  %v2100_v27 = vpop.f32.mrb[17].mxu1 }
 0xaba   : > { %v1847_v49 = vpop.f32.mrb[18].mxu1 }
 0xabb   : > { %v1850_v50 = vadd.f32 %v1845_v22, %v2596_v53  ;;  %v2101_v51 = vpop.f32.mrb[19].mxu1 }
 0xabd   : > { %1851 = vst.msk [vmem:[%s431_s24] sm:$0xff] %vm440_vm0, %v1850_v50 }
 0xabe   : > { %2202 = shalt.err (!%p2199_p3)
}
 0xabf   : > { %s2203_s0 = scalar_lea.hbm %s2659_s1, 128  ;;  %s2207_s24 = scalar_lea.hbm %s2715_s13, 256 }
 0xac0   : > { %p2204_p4 = scmp.ne.s32.totalorder %s2659_s1, %s2203_s0  ;;  %p2208_p9 = scmp.lt.u32.totalorder %s2659_s1, %s2715_s13 }
 0xac1   : > { %p2209_p10 = scmp.lt.u32.totalorder %s2207_s24, %s2203_s0  ;;  %p2211_p12 = scmp.lt.u32.totalorder %s2203_s0, %s2659_s1 }
 0xac2   : > { %p2205_p7 = pnand %p2204_p4, %p2374_p5 }
 0xac3   : > { %p2210_p11 = por %p2209_p10, %p2208_p9 }
 0xac4   : > { %p2206_p8 = pneg %p2205_p7 }
 0xac5   : > { %p2212_p13 = por %p2211_p12, %p2210_p11 }
 0xac7   : > { %p2213_p0 = pnand %p2212_p13, %p2206_p8 }
 0xac9   : > { %2216 = shalt.err (!%p2213_p0)
}
 0xaca   : > { %2102 = dma.vmem_to_hbm [thread:$0]  (%p2374_p5), %s2661_s30, 128, %s2659_s1, %s1853_s29  }
 0xacb PF: > { %p2108_p1 = scmp.ge.s32.totalorder %s2251_s28, 2  ;;  %s1878_s2 = sand.u32 1, %s2239_s25  }
 0xacc   : > { %s1879_s20 = scalar_lea.sflag [#allocation3], %s1878_s2 }
 0xacd   : > { %p2105_p2 = pnand %p2108_p1, %p2378_p6 }
 0xacf   : > { %2234 = dma.done.wait (!%p2105_p2), %s1879_s20, 128  }
 0xad0   : > { %2236 = vsyncadd (!%p2105_p2), %s1879_s20, 4294967168  ;;  %p23_p3 = scmp.ge.s32.totalorder %s2361_s14, 4   ;;  %s2724_s25 = smov %s2243_s26 }
 0xad1   : > { %s2725_s26 = smov %s2247_s27  ;;  %s2726_s27 = smov %s2372_s17 }
 0xad2   : > { %s2727_s28 = smov %s2361_s14  ;;  %25 = sbr.rel (!%p23_p3) target bundleno = 7 (0x7), region = 107 }
 0xad9   :  { %1884 = vsyncpa [#allocation3], 1 }
 0xada   :  { %1886 = vsyncpa [#allocation3 + $0x1], 1 }

</bundles_post_ra>
